<compile_context>
chip_gen: v7x
topology: tpu7x:2x2x1
jax: 0.10.0
libtpu: 0.0.40
codegen_flags: <defaults>
</compile_context>

<pallas_src>
import math

import jax
import jax.numpy as jnp
from jax.experimental import pallas as pl

INPUT_DIM = 16
D_MODEL = 32
NHEAD = 4
NUM_LAYERS = 2
HIDDEN_DIM = 64
NUM_CLASSES = 5
SEQ = 8
BATCH = 2
LN_EPS = 1e-5
HEAD_DIM = D_MODEL // NHEAD
NEG_INF = -1e9


def _layer_norm(x, gamma, beta):
    mu = jnp.mean(x, axis=-1, keepdims=True)
    var = jnp.mean((x - mu) ** 2, axis=-1, keepdims=True)
    return (x - mu) * jax.lax.rsqrt(var + LN_EPS) * gamma + beta


# --------------------------- fused forward kernel ----------------------------
def fused_forward_kernel(x_ref, len_ref, wp_ref, bp_ref, pe_ref,
                         wqkv_ref, bqkv_ref, woh_ref, bo_ref,
                         g1_ref, be1_ref, w1_ref, b1_ref,
                         w2_ref, b2_ref, g2_ref, be2_ref,
                         wf_ref, bf_ref, o_ref):
    B, S, In = x_ref.shape
    D = wp_ref.shape[1]
    L = wqkv_ref.shape[0]
    H = NHEAD
    Dh = D // H

    # Key-padding additive bias built in-register from lengths (B,1) int32.
    pos = jax.lax.broadcasted_iota(jnp.int32, (B, S), 1)
    kp_bias = jnp.where(pos >= len_ref[...], NEG_INF, 0.0).astype(jnp.float32)

    # Input projection + positional encoding on all B*S token rows at once.
    xf = x_ref[...].reshape(B * S, In)
    h = jnp.dot(xf, wp_ref[...], preferred_element_type=jnp.float32) + bp_ref[...]
    h = h + jnp.concatenate([pe_ref[...]] * B, axis=0)      # PE tiled over batch

    # Encoder layers (post-norm, ReLU FFN), statically unrolled.
    for li in range(L):
        wqkv = wqkv_ref[li]        # (D, 3D); Q columns pre-scaled by 1/sqrt(Dh)
        bqkv = bqkv_ref[li]        # (1, 3D)
        woh = woh_ref[li]          # (H, Dh, D) head-sliced output projection
        bo = bo_ref[li]            # (1, D)

        qkv = jnp.dot(h, wqkv, preferred_element_type=jnp.float32) + bqkv
        q, k, v = qkv[:, :D], qkv[:, D:2 * D], qkv[:, 2 * D:]

        attn_rows = []
        for b in range(B):                                   # B = 2, static unroll
            rows = slice(b * S, (b + 1) * S)
            # (H, S, Dh) head-major operands built from static head slices.
            qh = jnp.stack([q[rows, hi * Dh:(hi + 1) * Dh] for hi in range(H)], axis=0)
            kh = jnp.stack([k[rows, hi * Dh:(hi + 1) * Dh] for hi in range(H)], axis=0)
            vh = jnp.stack([v[rows, hi * Dh:(hi + 1) * Dh] for hi in range(H)], axis=0)

            # Batched over heads; no explicit transpose (contract last dims).
            s = jnp.einsum('hqd,hkd->hqk', qh, kh,
                           preferred_element_type=jnp.float32)          # (H,S,S)
            s = s + kp_bias[b:b + 1, :]          # broadcast over heads & queries
            s = s - jnp.max(s, axis=-1, keepdims=True)
            p = jnp.exp(s)
            p = p * pl.reciprocal(jnp.sum(p, axis=-1, keepdims=True), approx=True)

            ctx = jnp.einsum('hqk,hkd->hqd', p, vh,
                             preferred_element_type=jnp.float32)        # (H,S,Dh)
            # Fold the head concat into W_o: sum_h ctx_h @ Wo[h*Dh:(h+1)*Dh, :]
            ob = jnp.einsum('hqd,hde->hqe', ctx, woh,
                            preferred_element_type=jnp.float32).sum(axis=0)  # (S,D)
            attn_rows.append(ob)
        attn = jnp.concatenate(attn_rows, axis=0) + bo                  # (B*S, D)

        x1 = _layer_norm(h + attn, g1_ref[li], be1_ref[li])
        ff = jnp.dot(x1, w1_ref[li], preferred_element_type=jnp.float32) + b1_ref[li]
        ff = jnp.maximum(ff, 0.0)
        ff = jnp.dot(ff, w2_ref[li], preferred_element_type=jnp.float32) + b2_ref[li]
        h = _layer_norm(x1 + ff, g2_ref[li], be2_ref[li])

    # Mean over sequence (includes padded positions, like x.mean(dim=0)),
    # dropout is identity in eval, then the final linear classifier head.
    pooled = jnp.mean(h.reshape(B, S, D), axis=1)                       # (B, D)
    o_ref[...] = jnp.dot(pooled, wf_ref[...],
                         preferred_element_type=jnp.float32) + bf_ref[...]


# --------------------------------- wrapper -----------------------------------
@jax.jit
def transformer_classifier_forward(x, lengths, params):
    B = x.shape[0]
    lengths2d = lengths.reshape(B, 1).astype(jnp.int32)
    # Single fused invocation, no grid: all operands live in VMEM for the whole
    # forward pass on v5e/v6e/v7x (footprint far below the scoped VMEM default).
    return pl.pallas_call(
        fused_forward_kernel,
        out_shape=jax.ShapeDtypeStruct((B, NUM_CLASSES), jnp.float32),
    )(x, lengths2d,
      params["wp"], params["bp"], params["pe"],
      params["wqkv"], params["bqkv"], params["wo_h"], params["bo"],
      params["g1"], params["be1"], params["w1"], params["b1"],
      params["w2"], params["b2"], params["g2"], params["be2"],
      params["wf"], params["bf"])


# -------------------- deterministic parameter construction -------------------
def make_params(key):
    def nrm(k, shape, scale=0.1):
        return (scale * jax.random.normal(k, shape)).astype(jnp.float32)

    keys = jax.random.split(key, 4 + NUM_LAYERS)
    params = {
        "wp": nrm(keys[0], (INPUT_DIM, D_MODEL)),
        "bp": nrm(keys[1], (1, D_MODEL)),
        "wf": nrm(keys[2], (D_MODEL, NUM_CLASSES)),
        "bf": nrm(keys[3], (1, NUM_CLASSES)),
    }
    # Sinusoidal positional encoding (same formula as PositionalEncoding).
    position = jnp.arange(SEQ, dtype=jnp.float32)[:, None]
    div_term = jnp.exp(jnp.arange(0, D_MODEL, 2, dtype=jnp.float32)
                       * (-math.log(10000.0) / D_MODEL))
    pe = jnp.zeros((SEQ, D_MODEL), jnp.float32)
    pe = pe.at[:, 0::2].set(jnp.sin(position * div_term))
    pe = pe.at[:, 1::2].set(jnp.cos(position * div_term))
    params["pe"] = pe

    scale = 1.0 / math.sqrt(HEAD_DIM)
    stacked = {n: [] for n in ("wqkv", "bqkv", "wo_h", "bo", "g1", "be1",
                               "w1", "b1", "w2", "b2", "g2", "be2")}
    for li in range(NUM_LAYERS):
        ks = jax.random.split(keys[4 + li], 10)
        wq, bq = nrm(ks[0], (D_MODEL, D_MODEL)), nrm(ks[1], (1, D_MODEL))
        wk, bk = nrm(ks[2], (D_MODEL, D_MODEL)), nrm(ks[3], (1, D_MODEL))
        wv, bv = nrm(ks[4], (D_MODEL, D_MODEL)), nrm(ks[5], (1, D_MODEL))
        wo, bo = nrm(ks[6], (D_MODEL, D_MODEL)), nrm(ks[7], (1, D_MODEL))
        w1, w2 = nrm(ks[8], (D_MODEL, HIDDEN_DIM)), nrm(ks[9], (HIDDEN_DIM, D_MODEL))
        # Pack QKV; fold the 1/sqrt(head_dim) attention scale into the Q path.
        stacked["wqkv"].append(jnp.concatenate([wq * scale, wk, wv], axis=1))
        stacked["bqkv"].append(jnp.concatenate([bq * scale, bk, bv], axis=1))
        # Head-sliced W_o so the head concat folds into a batched contraction.
        stacked["wo_h"].append(wo.reshape(NHEAD, HEAD_DIM, D_MODEL))
        stacked["bo"].append(bo)
        stacked["g1"].append(jnp.ones((1, D_MODEL), jnp.float32))
        stacked["be1"].append(jnp.zeros((1, D_MODEL), jnp.float32))
        stacked["w1"].append(w1)
        stacked["b1"].append(jnp.zeros((1, HIDDEN_DIM), jnp.float32))
        stacked["w2"].append(w2)
        stacked["b2"].append(jnp.zeros((1, D_MODEL), jnp.float32))
        stacked["g2"].append(jnp.ones((1, D_MODEL), jnp.float32))
        stacked["be2"].append(jnp.zeros((1, D_MODEL), jnp.float32))
    for n, vals in stacked.items():
        params[n] = jnp.stack(vals, axis=0)
    return params


# ----------------------- pure-JAX reference (for check) ----------------------
def reference_forward(x, lengths, params):
    B, S, _ = x.shape
    pad_bias = jnp.where(jnp.arange(S)[None, :] >= lengths[:, None], NEG_INF, 0.0)
    h = x @ params["wp"] + params["bp"] + params["pe"][None]
    for li in range(NUM_LAYERS):
        qkv = h @ params["wqkv"][li] + params["bqkv"][li]
        q = qkv[..., :D_MODEL]
        k = qkv[..., D_MODEL:2 * D_MODEL]
        v = qkv[..., 2 * D_MODEL:]

        def split(m):
            return m.reshape(B, S, NHEAD, HEAD_DIM).transpose(0, 2, 1, 3)

        qh, kh, vh = split(q), split(k), split(v)
        s = jnp.einsum('bhqd,bhkd->bhqk', qh, kh) + pad_bias[:, None, None, :]
        p = jax.nn.softmax(s, axis=-1)
        ctx = jnp.einsum('bhqk,bhkd->bhqd', p, vh)
        ctx = ctx.transpose(0, 2, 1, 3).reshape(B, S, D_MODEL)
        attn = ctx @ params["wo_h"][li].reshape(D_MODEL, D_MODEL) + params["bo"][li]
        x1 = _layer_norm(h + attn, params["g1"][li], params["be1"][li])
        ff = jnp.maximum(x1 @ params["w1"][li] + params["b1"][li], 0.0)
        ff = ff @ params["w2"][li] + params["b2"][li]
        h = _layer_norm(x1 + ff, params["g2"][li], params["be2"][li])
    pooled = h.mean(axis=1)
    return pooled @ params["wf"] + params["bf"]


if __name__ == "__main__":
    key = jax.random.PRNGKey(0)
    kx, kp = jax.random.split(key)
    x = jax.random.normal(kx, (BATCH, SEQ, INPUT_DIM), dtype=jnp.float32)
    lengths = jnp.array([SEQ, 5], dtype=jnp.int32)   # variable-length sequences
    params = make_params(kp)

    logits = transformer_classifier_forward(x, lengths, params)
    logits = jax.block_until_ready(logits)

    assert logits.shape == (BATCH, NUM_CLASSES)
    assert bool(jnp.all(jnp.isfinite(logits)))

    # Numerical check against a pure-JAX reference (loose tolerance covers
    # approx-reciprocal softmax and MXU-vs-XLA matmul rounding differences).
    ref = reference_forward(x, lengths, params)
    max_err = float(jnp.max(jnp.abs(logits - ref)))
    assert max_err < 5e-2, (max_err, logits, ref)

    print("KERNEL_OK")
</pallas_src>

<mosaic_0001>
module attributes {stable_mosaic.version = 11 : i64} {
  func.func @fused_forward_kernel(%arg0: memref<2x8x16xf32, #tpu.memory_space<vmem>>, %arg1: memref<2x1xi32, #tpu.memory_space<vmem>>, %arg2: memref<16x32xf32, #tpu.memory_space<vmem>>, %arg3: memref<1x32xf32, #tpu.memory_space<vmem>>, %arg4: memref<8x32xf32, #tpu.memory_space<vmem>>, %arg5: memref<2x32x96xf32, #tpu.memory_space<vmem>>, %arg6: memref<2x1x96xf32, #tpu.memory_space<vmem>>, %arg7: memref<2x4x8x32xf32, #tpu.memory_space<vmem>>, %arg8: memref<2x1x32xf32, #tpu.memory_space<vmem>>, %arg9: memref<2x1x32xf32, #tpu.memory_space<vmem>>, %arg10: memref<2x1x32xf32, #tpu.memory_space<vmem>>, %arg11: memref<2x32x64xf32, #tpu.memory_space<vmem>>, %arg12: memref<2x1x64xf32, #tpu.memory_space<vmem>>, %arg13: memref<2x64x32xf32, #tpu.memory_space<vmem>>, %arg14: memref<2x1x32xf32, #tpu.memory_space<vmem>>, %arg15: memref<2x1x32xf32, #tpu.memory_space<vmem>>, %arg16: memref<2x1x32xf32, #tpu.memory_space<vmem>>, %arg17: memref<32x5xf32, #tpu.memory_space<vmem>>, %arg18: memref<1x5xf32, #tpu.memory_space<vmem>>, %arg19: memref<2x5xf32, #tpu.memory_space<vmem>>) attributes {dimension_semantics = [], scalar_prefetch = 0 : i64, scratch_operands = 0 : i64, tpu.core_type = #tpu.core_type<tc>} {
    %0 = tpu.iota {dimensions = array<i32: 1>} : vector<2x8xi32>
    %c0 = arith.constant 0 : index
    %c0_0 = arith.constant 0 : index
    %1 = vector.load %arg1[%c0, %c0_0] : memref<2x1xi32, #tpu.memory_space<vmem>>, vector<2x1xi32>
    %2 = vector.broadcast %1 : vector<2x1xi32> to vector<2x8xi32>
    %3 = arith.cmpi sge, %0, %2 : vector<2x8xi32>
    %cst = arith.constant -1.000000e+09 : f32
    %cst_1 = arith.constant 0.000000e+00 : f32
    %4 = vector.broadcast %cst : f32 to vector<2x8xf32>
    %5 = vector.broadcast %cst_1 : f32 to vector<2x8xf32>
    %6 = arith.select %3, %4, %5 : vector<2x8xi1>, vector<2x8xf32>
    %c0_2 = arith.constant 0 : index
    %c0_3 = arith.constant 0 : index
    %c0_4 = arith.constant 0 : index
    %7 = vector.load %arg0[%c0_2, %c0_3, %c0_4] : memref<2x8x16xf32, #tpu.memory_space<vmem>>, vector<2x8x16xf32>
    %8 = vector.shape_cast %7 : vector<2x8x16xf32> to vector<16x16xf32>
    %c0_5 = arith.constant 0 : index
    %c0_6 = arith.constant 0 : index
    %9 = vector.load %arg2[%c0_5, %c0_6] : memref<16x32xf32, #tpu.memory_space<vmem>>, vector<16x32xf32>
    %cst_7 = arith.constant dense<0.000000e+00> : vector<16x32xf32>
    %10 = tpu.matmul %8, %9, %cst_7 {dimension_numbers = #tpu.dot_dimension_numbers<[1], [0], [0], [1], [0, 0, 1, 1], [], []>} : vector<16x16xf32>, vector<16x32xf32>, vector<16x32xf32> -> vector<16x32xf32>
    %c0_8 = arith.constant 0 : index
    %c0_9 = arith.constant 0 : index
    %11 = vector.load %arg3[%c0_8, %c0_9] : memref<1x32xf32, #tpu.memory_space<vmem>>, vector<1x32xf32>
    %12 = vector.broadcast %11 : vector<1x32xf32> to vector<16x32xf32>
    %13 = arith.addf %10, %12 : vector<16x32xf32>
    %c0_10 = arith.constant 0 : index
    %c0_11 = arith.constant 0 : index
    %14 = vector.load %arg4[%c0_10, %c0_11] : memref<8x32xf32, #tpu.memory_space<vmem>>, vector<8x32xf32>
    %15 = tpu.concatenate %14, %14 in 0 : vector<8x32xf32>, vector<8x32xf32> -> vector<16x32xf32>
    %16 = arith.addf %13, %15 : vector<16x32xf32>
    %c0_12 = arith.constant 0 : index
    %c0_13 = arith.constant 0 : index
    %c0_14 = arith.constant 0 : index
    %17 = vector.load %arg5[%c0_12, %c0_13, %c0_14] : memref<2x32x96xf32, #tpu.memory_space<vmem>>, vector<1x32x96xf32>
    %18 = vector.shape_cast %17 : vector<1x32x96xf32> to vector<32x96xf32>
    %c0_15 = arith.constant 0 : index
    %c0_16 = arith.constant 0 : index
    %c0_17 = arith.constant 0 : index
    %19 = vector.load %arg6[%c0_15, %c0_16, %c0_17] : memref<2x1x96xf32, #tpu.memory_space<vmem>>, vector<1x1x96xf32>
    %20 = vector.shape_cast %19 : vector<1x1x96xf32> to vector<1x96xf32>
    %c0_18 = arith.constant 0 : index
    %c0_19 = arith.constant 0 : index
    %c0_20 = arith.constant 0 : index
    %c0_21 = arith.constant 0 : index
    %21 = vector.load %arg7[%c0_18, %c0_19, %c0_20, %c0_21] : memref<2x4x8x32xf32, #tpu.memory_space<vmem>>, vector<1x4x8x32xf32>
    %22 = vector.shape_cast %21 : vector<1x4x8x32xf32> to vector<4x8x32xf32>
    %c0_22 = arith.constant 0 : index
    %c0_23 = arith.constant 0 : index
    %c0_24 = arith.constant 0 : index
    %23 = vector.load %arg8[%c0_22, %c0_23, %c0_24] : memref<2x1x32xf32, #tpu.memory_space<vmem>>, vector<1x1x32xf32>
    %24 = vector.shape_cast %23 : vector<1x1x32xf32> to vector<1x32xf32>
    %cst_25 = arith.constant dense<0.000000e+00> : vector<16x96xf32>
    %25 = tpu.matmul %16, %18, %cst_25 {dimension_numbers = #tpu.dot_dimension_numbers<[1], [0], [0], [1], [0, 0, 1, 1], [], []>} : vector<16x32xf32>, vector<32x96xf32>, vector<16x96xf32> -> vector<16x96xf32>
    %26 = vector.broadcast %20 : vector<1x96xf32> to vector<16x96xf32>
    %27 = arith.addf %25, %26 : vector<16x96xf32>
    %28 = vector.extract_strided_slice %27 {offsets = [0, 0], sizes = [16, 32], strides = [1, 1]} : vector<16x96xf32> to vector<16x32xf32>
    %29 = vector.extract_strided_slice %27 {offsets = [0, 32], sizes = [16, 32], strides = [1, 1]} : vector<16x96xf32> to vector<16x32xf32>
    %30 = vector.extract_strided_slice %27 {offsets = [0, 64], sizes = [16, 32], strides = [1, 1]} : vector<16x96xf32> to vector<16x32xf32>
    %31 = vector.extract_strided_slice %28 {offsets = [0, 0], sizes = [8, 8], strides = [1, 1]} : vector<16x32xf32> to vector<8x8xf32>
    %32 = vector.extract_strided_slice %28 {offsets = [0, 8], sizes = [8, 8], strides = [1, 1]} : vector<16x32xf32> to vector<8x8xf32>
    %33 = vector.extract_strided_slice %28 {offsets = [0, 16], sizes = [8, 8], strides = [1, 1]} : vector<16x32xf32> to vector<8x8xf32>
    %34 = vector.extract_strided_slice %28 {offsets = [0, 24], sizes = [8, 8], strides = [1, 1]} : vector<16x32xf32> to vector<8x8xf32>
    %35 = vector.shape_cast %31 : vector<8x8xf32> to vector<1x8x8xf32>
    %36 = vector.shape_cast %32 : vector<8x8xf32> to vector<1x8x8xf32>
    %37 = vector.shape_cast %33 : vector<8x8xf32> to vector<1x8x8xf32>
    %38 = vector.shape_cast %34 : vector<8x8xf32> to vector<1x8x8xf32>
    %39 = tpu.concatenate %35, %36, %37, %38 in 0 : vector<1x8x8xf32>, vector<1x8x8xf32>, vector<1x8x8xf32>, vector<1x8x8xf32> -> vector<4x8x8xf32>
    %40 = vector.extract_strided_slice %29 {offsets = [0, 0], sizes = [8, 8], strides = [1, 1]} : vector<16x32xf32> to vector<8x8xf32>
    %41 = vector.extract_strided_slice %29 {offsets = [0, 8], sizes = [8, 8], strides = [1, 1]} : vector<16x32xf32> to vector<8x8xf32>
    %42 = vector.extract_strided_slice %29 {offsets = [0, 16], sizes = [8, 8], strides = [1, 1]} : vector<16x32xf32> to vector<8x8xf32>
    %43 = vector.extract_strided_slice %29 {offsets = [0, 24], sizes = [8, 8], strides = [1, 1]} : vector<16x32xf32> to vector<8x8xf32>
    %44 = vector.shape_cast %40 : vector<8x8xf32> to vector<1x8x8xf32>
    %45 = vector.shape_cast %41 : vector<8x8xf32> to vector<1x8x8xf32>
    %46 = vector.shape_cast %42 : vector<8x8xf32> to vector<1x8x8xf32>
    %47 = vector.shape_cast %43 : vector<8x8xf32> to vector<1x8x8xf32>
    %48 = tpu.concatenate %44, %45, %46, %47 in 0 : vector<1x8x8xf32>, vector<1x8x8xf32>, vector<1x8x8xf32>, vector<1x8x8xf32> -> vector<4x8x8xf32>
    %49 = vector.extract_strided_slice %30 {offsets = [0, 0], sizes = [8, 8], strides = [1, 1]} : vector<16x32xf32> to vector<8x8xf32>
    %50 = vector.extract_strided_slice %30 {offsets = [0, 8], sizes = [8, 8], strides = [1, 1]} : vector<16x32xf32> to vector<8x8xf32>
    %51 = vector.extract_strided_slice %30 {offsets = [0, 16], sizes = [8, 8], strides = [1, 1]} : vector<16x32xf32> to vector<8x8xf32>
    %52 = vector.extract_strided_slice %30 {offsets = [0, 24], sizes = [8, 8], strides = [1, 1]} : vector<16x32xf32> to vector<8x8xf32>
    %53 = vector.shape_cast %49 : vector<8x8xf32> to vector<1x8x8xf32>
    %54 = vector.shape_cast %50 : vector<8x8xf32> to vector<1x8x8xf32>
    %55 = vector.shape_cast %51 : vector<8x8xf32> to vector<1x8x8xf32>
    %56 = vector.shape_cast %52 : vector<8x8xf32> to vector<1x8x8xf32>
    %57 = tpu.concatenate %53, %54, %55, %56 in 0 : vector<1x8x8xf32>, vector<1x8x8xf32>, vector<1x8x8xf32>, vector<1x8x8xf32> -> vector<4x8x8xf32>
    "tpu.trace_start"() <{level = 10 : i32, message = "hqd,hkd->hqk"}> : () -> ()
    %cst_26 = arith.constant dense<0.000000e+00> : vector<4x8x8xf32>
    %58 = tpu.matmul %39, %48, %cst_26 {dimension_numbers = #tpu.dot_dimension_numbers<[2], [2], [1], [1], [0, 0, 0, 1, 1, 1], [0], [0]>} : vector<4x8x8xf32>, vector<4x8x8xf32>, vector<4x8x8xf32> -> vector<4x8x8xf32>
    "tpu.trace_stop"() : () -> ()
    %59 = vector.extract_strided_slice %6 {offsets = [0, 0], sizes = [1, 8], strides = [1, 1]} : vector<2x8xf32> to vector<1x8xf32>
    %60 = vector.shape_cast %59 : vector<1x8xf32> to vector<1x1x8xf32>
    %61 = vector.broadcast %60 : vector<1x1x8xf32> to vector<4x8x8xf32>
    %62 = arith.addf %58, %61 : vector<4x8x8xf32>
    %cst_27 = arith.constant dense<0xFF800000> : vector<4x8xf32>
    %63 = vector.multi_reduction <maximumf>, %62, %cst_27 [2] : vector<4x8x8xf32> to vector<4x8xf32>
    %64 = vector.shape_cast %63 : vector<4x8xf32> to vector<4x8x1xf32>
    %65 = vector.broadcast %64 : vector<4x8x1xf32> to vector<4x8x8xf32>
    %66 = arith.subf %62, %65 : vector<4x8x8xf32>
    %67 = math.exp %66 : vector<4x8x8xf32>
    %cst_28 = arith.constant dense<0.000000e+00> : vector<4x8xf32>
    %68 = vector.multi_reduction <add>, %67, %cst_28 [2] : vector<4x8x8xf32> to vector<4x8xf32>
    %69 = vector.shape_cast %68 : vector<4x8xf32> to vector<4x8x1xf32>
    %70 = tpu.reciprocal %69 {approx = true} : vector<4x8x1xf32> -> vector<4x8x1xf32>
    %71 = vector.broadcast %70 : vector<4x8x1xf32> to vector<4x8x8xf32>
    %72 = arith.mulf %67, %71 : vector<4x8x8xf32>
    "tpu.trace_start"() <{level = 10 : i32, message = "hqk,hkd->hqd"}> : () -> ()
    %cst_29 = arith.constant dense<0.000000e+00> : vector<4x8x8xf32>
    %73 = tpu.matmul %72, %57, %cst_29 {dimension_numbers = #tpu.dot_dimension_numbers<[2], [1], [1], [2], [0, 0, 0, 1, 1, 2], [0], [0]>} : vector<4x8x8xf32>, vector<4x8x8xf32>, vector<4x8x8xf32> -> vector<4x8x8xf32>
    "tpu.trace_stop"() : () -> ()
    "tpu.trace_start"() <{level = 10 : i32, message = "hqd,hde->hqe"}> : () -> ()
    %cst_30 = arith.constant dense<0.000000e+00> : vector<4x8x32xf32>
    %74 = tpu.matmul %73, %22, %cst_30 {dimension_numbers = #tpu.dot_dimension_numbers<[2], [1], [1], [2], [0, 0, 0, 1, 1, 2], [0], [0]>} : vector<4x8x8xf32>, vector<4x8x32xf32>, vector<4x8x32xf32> -> vector<4x8x32xf32>
    "tpu.trace_stop"() : () -> ()
    %cst_31 = arith.constant dense<0.000000e+00> : vector<8x32xf32>
    %75 = vector.multi_reduction <add>, %74, %cst_31 [0] : vector<4x8x32xf32> to vector<8x32xf32>
    %76 = vector.extract_strided_slice %28 {offsets = [8, 0], sizes = [8, 8], strides = [1, 1]} : vector<16x32xf32> to vector<8x8xf32>
    %77 = vector.extract_strided_slice %28 {offsets = [8, 8], sizes = [8, 8], strides = [1, 1]} : vector<16x32xf32> to vector<8x8xf32>
    %78 = vector.extract_strided_slice %28 {offsets = [8, 16], sizes = [8, 8], strides = [1, 1]} : vector<16x32xf32> to vector<8x8xf32>
    %79 = vector.extract_strided_slice %28 {offsets = [8, 24], sizes = [8, 8], strides = [1, 1]} : vector<16x32xf32> to vector<8x8xf32>
    %80 = vector.shape_cast %76 : vector<8x8xf32> to vector<1x8x8xf32>
    %81 = vector.shape_cast %77 : vector<8x8xf32> to vector<1x8x8xf32>
    %82 = vector.shape_cast %78 : vector<8x8xf32> to vector<1x8x8xf32>
    %83 = vector.shape_cast %79 : vector<8x8xf32> to vector<1x8x8xf32>
    %84 = tpu.concatenate %80, %81, %82, %83 in 0 : vector<1x8x8xf32>, vector<1x8x8xf32>, vector<1x8x8xf32>, vector<1x8x8xf32> -> vector<4x8x8xf32>
    %85 = vector.extract_strided_slice %29 {offsets = [8, 0], sizes = [8, 8], strides = [1, 1]} : vector<16x32xf32> to vector<8x8xf32>
    %86 = vector.extract_strided_slice %29 {offsets = [8, 8], sizes = [8, 8], strides = [1, 1]} : vector<16x32xf32> to vector<8x8xf32>
    %87 = vector.extract_strided_slice %29 {offsets = [8, 16], sizes = [8, 8], strides = [1, 1]} : vector<16x32xf32> to vector<8x8xf32>
    %88 = vector.extract_strided_slice %29 {offsets = [8, 24], sizes = [8, 8], strides = [1, 1]} : vector<16x32xf32> to vector<8x8xf32>
    %89 = vector.shape_cast %85 : vector<8x8xf32> to vector<1x8x8xf32>
    %90 = vector.shape_cast %86 : vector<8x8xf32> to vector<1x8x8xf32>
    %91 = vector.shape_cast %87 : vector<8x8xf32> to vector<1x8x8xf32>
    %92 = vector.shape_cast %88 : vector<8x8xf32> to vector<1x8x8xf32>
    %93 = tpu.concatenate %89, %90, %91, %92 in 0 : vector<1x8x8xf32>, vector<1x8x8xf32>, vector<1x8x8xf32>, vector<1x8x8xf32> -> vector<4x8x8xf32>
    %94 = vector.extract_strided_slice %30 {offsets = [8, 0], sizes = [8, 8], strides = [1, 1]} : vector<16x32xf32> to vector<8x8xf32>
    %95 = vector.extract_strided_slice %30 {offsets = [8, 8], sizes = [8, 8], strides = [1, 1]} : vector<16x32xf32> to vector<8x8xf32>
    %96 = vector.extract_strided_slice %30 {offsets = [8, 16], sizes = [8, 8], strides = [1, 1]} : vector<16x32xf32> to vector<8x8xf32>
    %97 = vector.extract_strided_slice %30 {offsets = [8, 24], sizes = [8, 8], strides = [1, 1]} : vector<16x32xf32> to vector<8x8xf32>
    %98 = vector.shape_cast %94 : vector<8x8xf32> to vector<1x8x8xf32>
    %99 = vector.shape_cast %95 : vector<8x8xf32> to vector<1x8x8xf32>
    %100 = vector.shape_cast %96 : vector<8x8xf32> to vector<1x8x8xf32>
    %101 = vector.shape_cast %97 : vector<8x8xf32> to vector<1x8x8xf32>
    %102 = tpu.concatenate %98, %99, %100, %101 in 0 : vector<1x8x8xf32>, vector<1x8x8xf32>, vector<1x8x8xf32>, vector<1x8x8xf32> -> vector<4x8x8xf32>
    "tpu.trace_start"() <{level = 10 : i32, message = "hqd,hkd->hqk"}> : () -> ()
    %cst_32 = arith.constant dense<0.000000e+00> : vector<4x8x8xf32>
    %103 = tpu.matmul %84, %93, %cst_32 {dimension_numbers = #tpu.dot_dimension_numbers<[2], [2], [1], [1], [0, 0, 0, 1, 1, 1], [0], [0]>} : vector<4x8x8xf32>, vector<4x8x8xf32>, vector<4x8x8xf32> -> vector<4x8x8xf32>
    "tpu.trace_stop"() : () -> ()
    %104 = vector.extract_strided_slice %6 {offsets = [1, 0], sizes = [1, 8], strides = [1, 1]} : vector<2x8xf32> to vector<1x8xf32>
    %105 = vector.shape_cast %104 : vector<1x8xf32> to vector<1x1x8xf32>
    %106 = vector.broadcast %105 : vector<1x1x8xf32> to vector<4x8x8xf32>
    %107 = arith.addf %103, %106 : vector<4x8x8xf32>
    %cst_33 = arith.constant dense<0xFF800000> : vector<4x8xf32>
    %108 = vector.multi_reduction <maximumf>, %107, %cst_33 [2] : vector<4x8x8xf32> to vector<4x8xf32>
    %109 = vector.shape_cast %108 : vector<4x8xf32> to vector<4x8x1xf32>
    %110 = vector.broadcast %109 : vector<4x8x1xf32> to vector<4x8x8xf32>
    %111 = arith.subf %107, %110 : vector<4x8x8xf32>
    %112 = math.exp %111 : vector<4x8x8xf32>
    %cst_34 = arith.constant dense<0.000000e+00> : vector<4x8xf32>
    %113 = vector.multi_reduction <add>, %112, %cst_34 [2] : vector<4x8x8xf32> to vector<4x8xf32>
    %114 = vector.shape_cast %113 : vector<4x8xf32> to vector<4x8x1xf32>
    %115 = tpu.reciprocal %114 {approx = true} : vector<4x8x1xf32> -> vector<4x8x1xf32>
    %116 = vector.broadcast %115 : vector<4x8x1xf32> to vector<4x8x8xf32>
    %117 = arith.mulf %112, %116 : vector<4x8x8xf32>
    "tpu.trace_start"() <{level = 10 : i32, message = "hqk,hkd->hqd"}> : () -> ()
    %cst_35 = arith.constant dense<0.000000e+00> : vector<4x8x8xf32>
    %118 = tpu.matmul %117, %102, %cst_35 {dimension_numbers = #tpu.dot_dimension_numbers<[2], [1], [1], [2], [0, 0, 0, 1, 1, 2], [0], [0]>} : vector<4x8x8xf32>, vector<4x8x8xf32>, vector<4x8x8xf32> -> vector<4x8x8xf32>
    "tpu.trace_stop"() : () -> ()
    "tpu.trace_start"() <{level = 10 : i32, message = "hqd,hde->hqe"}> : () -> ()
    %cst_36 = arith.constant dense<0.000000e+00> : vector<4x8x32xf32>
    %119 = tpu.matmul %118, %22, %cst_36 {dimension_numbers = #tpu.dot_dimension_numbers<[2], [1], [1], [2], [0, 0, 0, 1, 1, 2], [0], [0]>} : vector<4x8x8xf32>, vector<4x8x32xf32>, vector<4x8x32xf32> -> vector<4x8x32xf32>
    "tpu.trace_stop"() : () -> ()
    %cst_37 = arith.constant dense<0.000000e+00> : vector<8x32xf32>
    %120 = vector.multi_reduction <add>, %119, %cst_37 [0] : vector<4x8x32xf32> to vector<8x32xf32>
    %121 = tpu.concatenate %75, %120 in 0 : vector<8x32xf32>, vector<8x32xf32> -> vector<16x32xf32>
    %122 = vector.broadcast %24 : vector<1x32xf32> to vector<16x32xf32>
    %123 = arith.addf %121, %122 : vector<16x32xf32>
    %124 = arith.addf %16, %123 : vector<16x32xf32>
    %c0_38 = arith.constant 0 : index
    %c0_39 = arith.constant 0 : index
    %c0_40 = arith.constant 0 : index
    %125 = vector.load %arg9[%c0_38, %c0_39, %c0_40] : memref<2x1x32xf32, #tpu.memory_space<vmem>>, vector<1x1x32xf32>
    %126 = vector.shape_cast %125 : vector<1x1x32xf32> to vector<1x32xf32>
    %c0_41 = arith.constant 0 : index
    %c0_42 = arith.constant 0 : index
    %c0_43 = arith.constant 0 : index
    %127 = vector.load %arg10[%c0_41, %c0_42, %c0_43] : memref<2x1x32xf32, #tpu.memory_space<vmem>>, vector<1x1x32xf32>
    %128 = vector.shape_cast %127 : vector<1x1x32xf32> to vector<1x32xf32>
    %cst_44 = arith.constant dense<0.000000e+00> : vector<16xf32>
    %129 = vector.multi_reduction <add>, %124, %cst_44 [1] : vector<16x32xf32> to vector<16xf32>
    %130 = vector.shape_cast %129 : vector<16xf32> to vector<16x1xf32>
    %cst_45 = arith.constant 3.200000e+01 : f32
    %131 = vector.broadcast %cst_45 : f32 to vector<16x1xf32>
    %132 = arith.divf %130, %131 : vector<16x1xf32>
    %133 = vector.broadcast %132 : vector<16x1xf32> to vector<16x32xf32>
    %134 = arith.subf %124, %133 : vector<16x32xf32>
    %135 = arith.mulf %134, %134 : vector<16x32xf32>
    %cst_46 = arith.constant dense<0.000000e+00> : vector<16xf32>
    %136 = vector.multi_reduction <add>, %135, %cst_46 [1] : vector<16x32xf32> to vector<16xf32>
    %137 = vector.shape_cast %136 : vector<16xf32> to vector<16x1xf32>
    %cst_47 = arith.constant 3.200000e+01 : f32
    %138 = vector.broadcast %cst_47 : f32 to vector<16x1xf32>
    %139 = arith.divf %137, %138 : vector<16x1xf32>
    %140 = vector.broadcast %132 : vector<16x1xf32> to vector<16x32xf32>
    %141 = arith.subf %124, %140 : vector<16x32xf32>
    %cst_48 = arith.constant 9.99999974E-6 : f32
    %142 = vector.broadcast %cst_48 : f32 to vector<16x1xf32>
    %143 = arith.addf %139, %142 : vector<16x1xf32>
    %144 = math.rsqrt %143 : vector<16x1xf32>
    %145 = vector.broadcast %144 : vector<16x1xf32> to vector<16x32xf32>
    %146 = arith.mulf %141, %145 : vector<16x32xf32>
    %147 = vector.broadcast %126 : vector<1x32xf32> to vector<16x32xf32>
    %148 = arith.mulf %146, %147 : vector<16x32xf32>
    %149 = vector.broadcast %128 : vector<1x32xf32> to vector<16x32xf32>
    %150 = arith.addf %148, %149 : vector<16x32xf32>
    %c0_49 = arith.constant 0 : index
    %c0_50 = arith.constant 0 : index
    %c0_51 = arith.constant 0 : index
    %151 = vector.load %arg11[%c0_49, %c0_50, %c0_51] : memref<2x32x64xf32, #tpu.memory_space<vmem>>, vector<1x32x64xf32>
    %152 = vector.shape_cast %151 : vector<1x32x64xf32> to vector<32x64xf32>
    %cst_52 = arith.constant dense<0.000000e+00> : vector<16x64xf32>
    %153 = tpu.matmul %150, %152, %cst_52 {dimension_numbers = #tpu.dot_dimension_numbers<[1], [0], [0], [1], [0, 0, 1, 1], [], []>} : vector<16x32xf32>, vector<32x64xf32>, vector<16x64xf32> -> vector<16x64xf32>
    %c0_53 = arith.constant 0 : index
    %c0_54 = arith.constant 0 : index
    %c0_55 = arith.constant 0 : index
    %154 = vector.load %arg12[%c0_53, %c0_54, %c0_55] : memref<2x1x64xf32, #tpu.memory_space<vmem>>, vector<1x1x64xf32>
    %155 = vector.shape_cast %154 : vector<1x1x64xf32> to vector<1x64xf32>
    %156 = vector.broadcast %155 : vector<1x64xf32> to vector<16x64xf32>
    %157 = arith.addf %153, %156 : vector<16x64xf32>
    %cst_56 = arith.constant 0.000000e+00 : f32
    %158 = vector.broadcast %cst_56 : f32 to vector<16x64xf32>
    %159 = arith.maximumf %157, %158 : vector<16x64xf32>
    %c0_57 = arith.constant 0 : index
    %c0_58 = arith.constant 0 : index
    %c0_59 = arith.constant 0 : index
    %160 = vector.load %arg13[%c0_57, %c0_58, %c0_59] : memref<2x64x32xf32, #tpu.memory_space<vmem>>, vector<1x64x32xf32>
    %161 = vector.shape_cast %160 : vector<1x64x32xf32> to vector<64x32xf32>
    %cst_60 = arith.constant dense<0.000000e+00> : vector<16x32xf32>
    %162 = tpu.matmul %159, %161, %cst_60 {dimension_numbers = #tpu.dot_dimension_numbers<[1], [0], [0], [1], [0, 0, 1, 1], [], []>} : vector<16x64xf32>, vector<64x32xf32>, vector<16x32xf32> -> vector<16x32xf32>
    %c0_61 = arith.constant 0 : index
    %c0_62 = arith.constant 0 : index
    %c0_63 = arith.constant 0 : index
    %163 = vector.load %arg14[%c0_61, %c0_62, %c0_63] : memref<2x1x32xf32, #tpu.memory_space<vmem>>, vector<1x1x32xf32>
    %164 = vector.shape_cast %163 : vector<1x1x32xf32> to vector<1x32xf32>
    %165 = vector.broadcast %164 : vector<1x32xf32> to vector<16x32xf32>
    %166 = arith.addf %162, %165 : vector<16x32xf32>
    %167 = arith.addf %150, %166 : vector<16x32xf32>
    %c0_64 = arith.constant 0 : index
    %c0_65 = arith.constant 0 : index
    %c0_66 = arith.constant 0 : index
    %168 = vector.load %arg15[%c0_64, %c0_65, %c0_66] : memref<2x1x32xf32, #tpu.memory_space<vmem>>, vector<1x1x32xf32>
    %169 = vector.shape_cast %168 : vector<1x1x32xf32> to vector<1x32xf32>
    %c0_67 = arith.constant 0 : index
    %c0_68 = arith.constant 0 : index
    %c0_69 = arith.constant 0 : index
    %170 = vector.load %arg16[%c0_67, %c0_68, %c0_69] : memref<2x1x32xf32, #tpu.memory_space<vmem>>, vector<1x1x32xf32>
    %171 = vector.shape_cast %170 : vector<1x1x32xf32> to vector<1x32xf32>
    %cst_70 = arith.constant dense<0.000000e+00> : vector<16xf32>
    %172 = vector.multi_reduction <add>, %167, %cst_70 [1] : vector<16x32xf32> to vector<16xf32>
    %173 = vector.shape_cast %172 : vector<16xf32> to vector<16x1xf32>
    %cst_71 = arith.constant 3.200000e+01 : f32
    %174 = vector.broadcast %cst_71 : f32 to vector<16x1xf32>
    %175 = arith.divf %173, %174 : vector<16x1xf32>
    %176 = vector.broadcast %175 : vector<16x1xf32> to vector<16x32xf32>
    %177 = arith.subf %167, %176 : vector<16x32xf32>
    %178 = arith.mulf %177, %177 : vector<16x32xf32>
    %cst_72 = arith.constant dense<0.000000e+00> : vector<16xf32>
    %179 = vector.multi_reduction <add>, %178, %cst_72 [1] : vector<16x32xf32> to vector<16xf32>
    %180 = vector.shape_cast %179 : vector<16xf32> to vector<16x1xf32>
    %cst_73 = arith.constant 3.200000e+01 : f32
    %181 = vector.broadcast %cst_73 : f32 to vector<16x1xf32>
    %182 = arith.divf %180, %181 : vector<16x1xf32>
    %183 = vector.broadcast %175 : vector<16x1xf32> to vector<16x32xf32>
    %184 = arith.subf %167, %183 : vector<16x32xf32>
    %cst_74 = arith.constant 9.99999974E-6 : f32
    %185 = vector.broadcast %cst_74 : f32 to vector<16x1xf32>
    %186 = arith.addf %182, %185 : vector<16x1xf32>
    %187 = math.rsqrt %186 : vector<16x1xf32>
    %188 = vector.broadcast %187 : vector<16x1xf32> to vector<16x32xf32>
    %189 = arith.mulf %184, %188 : vector<16x32xf32>
    %190 = vector.broadcast %169 : vector<1x32xf32> to vector<16x32xf32>
    %191 = arith.mulf %189, %190 : vector<16x32xf32>
    %192 = vector.broadcast %171 : vector<1x32xf32> to vector<16x32xf32>
    %193 = arith.addf %191, %192 : vector<16x32xf32>
    %c1 = arith.constant 1 : index
    %c0_75 = arith.constant 0 : index
    %c0_76 = arith.constant 0 : index
    %194 = vector.load %arg5[%c1, %c0_75, %c0_76] : memref<2x32x96xf32, #tpu.memory_space<vmem>>, vector<1x32x96xf32>
    %195 = vector.shape_cast %194 : vector<1x32x96xf32> to vector<32x96xf32>
    %c1_77 = arith.constant 1 : index
    %c0_78 = arith.constant 0 : index
    %c0_79 = arith.constant 0 : index
    %196 = vector.load %arg6[%c1_77, %c0_78, %c0_79] : memref<2x1x96xf32, #tpu.memory_space<vmem>>, vector<1x1x96xf32>
    %197 = vector.shape_cast %196 : vector<1x1x96xf32> to vector<1x96xf32>
    %c1_80 = arith.constant 1 : index
    %c0_81 = arith.constant 0 : index
    %c0_82 = arith.constant 0 : index
    %c0_83 = arith.constant 0 : index
    %198 = vector.load %arg7[%c1_80, %c0_81, %c0_82, %c0_83] : memref<2x4x8x32xf32, #tpu.memory_space<vmem>>, vector<1x4x8x32xf32>
    %199 = vector.shape_cast %198 : vector<1x4x8x32xf32> to vector<4x8x32xf32>
    %c1_84 = arith.constant 1 : index
    %c0_85 = arith.constant 0 : index
    %c0_86 = arith.constant 0 : index
    %200 = vector.load %arg8[%c1_84, %c0_85, %c0_86] : memref<2x1x32xf32, #tpu.memory_space<vmem>>, vector<1x1x32xf32>
    %201 = vector.shape_cast %200 : vector<1x1x32xf32> to vector<1x32xf32>
    %cst_87 = arith.constant dense<0.000000e+00> : vector<16x96xf32>
    %202 = tpu.matmul %193, %195, %cst_87 {dimension_numbers = #tpu.dot_dimension_numbers<[1], [0], [0], [1], [0, 0, 1, 1], [], []>} : vector<16x32xf32>, vector<32x96xf32>, vector<16x96xf32> -> vector<16x96xf32>
    %203 = vector.broadcast %197 : vector<1x96xf32> to vector<16x96xf32>
    %204 = arith.addf %202, %203 : vector<16x96xf32>
    %205 = vector.extract_strided_slice %204 {offsets = [0, 0], sizes = [16, 32], strides = [1, 1]} : vector<16x96xf32> to vector<16x32xf32>
    %206 = vector.extract_strided_slice %204 {offsets = [0, 32], sizes = [16, 32], strides = [1, 1]} : vector<16x96xf32> to vector<16x32xf32>
    %207 = vector.extract_strided_slice %204 {offsets = [0, 64], sizes = [16, 32], strides = [1, 1]} : vector<16x96xf32> to vector<16x32xf32>
    %208 = vector.extract_strided_slice %205 {offsets = [0, 0], sizes = [8, 8], strides = [1, 1]} : vector<16x32xf32> to vector<8x8xf32>
    %209 = vector.extract_strided_slice %205 {offsets = [0, 8], sizes = [8, 8], strides = [1, 1]} : vector<16x32xf32> to vector<8x8xf32>
    %210 = vector.extract_strided_slice %205 {offsets = [0, 16], sizes = [8, 8], strides = [1, 1]} : vector<16x32xf32> to vector<8x8xf32>
    %211 = vector.extract_strided_slice %205 {offsets = [0, 24], sizes = [8, 8], strides = [1, 1]} : vector<16x32xf32> to vector<8x8xf32>
    %212 = vector.shape_cast %208 : vector<8x8xf32> to vector<1x8x8xf32>
    %213 = vector.shape_cast %209 : vector<8x8xf32> to vector<1x8x8xf32>
    %214 = vector.shape_cast %210 : vector<8x8xf32> to vector<1x8x8xf32>
    %215 = vector.shape_cast %211 : vector<8x8xf32> to vector<1x8x8xf32>
    %216 = tpu.concatenate %212, %213, %214, %215 in 0 : vector<1x8x8xf32>, vector<1x8x8xf32>, vector<1x8x8xf32>, vector<1x8x8xf32> -> vector<4x8x8xf32>
    %217 = vector.extract_strided_slice %206 {offsets = [0, 0], sizes = [8, 8], strides = [1, 1]} : vector<16x32xf32> to vector<8x8xf32>
    %218 = vector.extract_strided_slice %206 {offsets = [0, 8], sizes = [8, 8], strides = [1, 1]} : vector<16x32xf32> to vector<8x8xf32>
    %219 = vector.extract_strided_slice %206 {offsets = [0, 16], sizes = [8, 8], strides = [1, 1]} : vector<16x32xf32> to vector<8x8xf32>
    %220 = vector.extract_strided_slice %206 {offsets = [0, 24], sizes = [8, 8], strides = [1, 1]} : vector<16x32xf32> to vector<8x8xf32>
    %221 = vector.shape_cast %217 : vector<8x8xf32> to vector<1x8x8xf32>
    %222 = vector.shape_cast %218 : vector<8x8xf32> to vector<1x8x8xf32>
    %223 = vector.shape_cast %219 : vector<8x8xf32> to vector<1x8x8xf32>
    %224 = vector.shape_cast %220 : vector<8x8xf32> to vector<1x8x8xf32>
    %225 = tpu.concatenate %221, %222, %223, %224 in 0 : vector<1x8x8xf32>, vector<1x8x8xf32>, vector<1x8x8xf32>, vector<1x8x8xf32> -> vector<4x8x8xf32>
    %226 = vector.extract_strided_slice %207 {offsets = [0, 0], sizes = [8, 8], strides = [1, 1]} : vector<16x32xf32> to vector<8x8xf32>
    %227 = vector.extract_strided_slice %207 {offsets = [0, 8], sizes = [8, 8], strides = [1, 1]} : vector<16x32xf32> to vector<8x8xf32>
    %228 = vector.extract_strided_slice %207 {offsets = [0, 16], sizes = [8, 8], strides = [1, 1]} : vector<16x32xf32> to vector<8x8xf32>
    %229 = vector.extract_strided_slice %207 {offsets = [0, 24], sizes = [8, 8], strides = [1, 1]} : vector<16x32xf32> to vector<8x8xf32>
    %230 = vector.shape_cast %226 : vector<8x8xf32> to vector<1x8x8xf32>
    %231 = vector.shape_cast %227 : vector<8x8xf32> to vector<1x8x8xf32>
    %232 = vector.shape_cast %228 : vector<8x8xf32> to vector<1x8x8xf32>
    %233 = vector.shape_cast %229 : vector<8x8xf32> to vector<1x8x8xf32>
    %234 = tpu.concatenate %230, %231, %232, %233 in 0 : vector<1x8x8xf32>, vector<1x8x8xf32>, vector<1x8x8xf32>, vector<1x8x8xf32> -> vector<4x8x8xf32>
    "tpu.trace_start"() <{level = 10 : i32, message = "hqd,hkd->hqk"}> : () -> ()
    %cst_88 = arith.constant dense<0.000000e+00> : vector<4x8x8xf32>
    %235 = tpu.matmul %216, %225, %cst_88 {dimension_numbers = #tpu.dot_dimension_numbers<[2], [2], [1], [1], [0, 0, 0, 1, 1, 1], [0], [0]>} : vector<4x8x8xf32>, vector<4x8x8xf32>, vector<4x8x8xf32> -> vector<4x8x8xf32>
    "tpu.trace_stop"() : () -> ()
    %236 = vector.extract_strided_slice %6 {offsets = [0, 0], sizes = [1, 8], strides = [1, 1]} : vector<2x8xf32> to vector<1x8xf32>
    %237 = vector.shape_cast %236 : vector<1x8xf32> to vector<1x1x8xf32>
    %238 = vector.broadcast %237 : vector<1x1x8xf32> to vector<4x8x8xf32>
    %239 = arith.addf %235, %238 : vector<4x8x8xf32>
    %cst_89 = arith.constant dense<0xFF800000> : vector<4x8xf32>
    %240 = vector.multi_reduction <maximumf>, %239, %cst_89 [2] : vector<4x8x8xf32> to vector<4x8xf32>
    %241 = vector.shape_cast %240 : vector<4x8xf32> to vector<4x8x1xf32>
    %242 = vector.broadcast %241 : vector<4x8x1xf32> to vector<4x8x8xf32>
    %243 = arith.subf %239, %242 : vector<4x8x8xf32>
    %244 = math.exp %243 : vector<4x8x8xf32>
    %cst_90 = arith.constant dense<0.000000e+00> : vector<4x8xf32>
    %245 = vector.multi_reduction <add>, %244, %cst_90 [2] : vector<4x8x8xf32> to vector<4x8xf32>
    %246 = vector.shape_cast %245 : vector<4x8xf32> to vector<4x8x1xf32>
    %247 = tpu.reciprocal %246 {approx = true} : vector<4x8x1xf32> -> vector<4x8x1xf32>
    %248 = vector.broadcast %247 : vector<4x8x1xf32> to vector<4x8x8xf32>
    %249 = arith.mulf %244, %248 : vector<4x8x8xf32>
    "tpu.trace_start"() <{level = 10 : i32, message = "hqk,hkd->hqd"}> : () -> ()
    %cst_91 = arith.constant dense<0.000000e+00> : vector<4x8x8xf32>
    %250 = tpu.matmul %249, %234, %cst_91 {dimension_numbers = #tpu.dot_dimension_numbers<[2], [1], [1], [2], [0, 0, 0, 1, 1, 2], [0], [0]>} : vector<4x8x8xf32>, vector<4x8x8xf32>, vector<4x8x8xf32> -> vector<4x8x8xf32>
    "tpu.trace_stop"() : () -> ()
    "tpu.trace_start"() <{level = 10 : i32, message = "hqd,hde->hqe"}> : () -> ()
    %cst_92 = arith.constant dense<0.000000e+00> : vector<4x8x32xf32>
    %251 = tpu.matmul %250, %199, %cst_92 {dimension_numbers = #tpu.dot_dimension_numbers<[2], [1], [1], [2], [0, 0, 0, 1, 1, 2], [0], [0]>} : vector<4x8x8xf32>, vector<4x8x32xf32>, vector<4x8x32xf32> -> vector<4x8x32xf32>
    "tpu.trace_stop"() : () -> ()
    %cst_93 = arith.constant dense<0.000000e+00> : vector<8x32xf32>
    %252 = vector.multi_reduction <add>, %251, %cst_93 [0] : vector<4x8x32xf32> to vector<8x32xf32>
    %253 = vector.extract_strided_slice %205 {offsets = [8, 0], sizes = [8, 8], strides = [1, 1]} : vector<16x32xf32> to vector<8x8xf32>
    %254 = vector.extract_strided_slice %205 {offsets = [8, 8], sizes = [8, 8], strides = [1, 1]} : vector<16x32xf32> to vector<8x8xf32>
    %255 = vector.extract_strided_slice %205 {offsets = [8, 16], sizes = [8, 8], strides = [1, 1]} : vector<16x32xf32> to vector<8x8xf32>
    %256 = vector.extract_strided_slice %205 {offsets = [8, 24], sizes = [8, 8], strides = [1, 1]} : vector<16x32xf32> to vector<8x8xf32>
    %257 = vector.shape_cast %253 : vector<8x8xf32> to vector<1x8x8xf32>
    %258 = vector.shape_cast %254 : vector<8x8xf32> to vector<1x8x8xf32>
    %259 = vector.shape_cast %255 : vector<8x8xf32> to vector<1x8x8xf32>
    %260 = vector.shape_cast %256 : vector<8x8xf32> to vector<1x8x8xf32>
    %261 = tpu.concatenate %257, %258, %259, %260 in 0 : vector<1x8x8xf32>, vector<1x8x8xf32>, vector<1x8x8xf32>, vector<1x8x8xf32> -> vector<4x8x8xf32>
    %262 = vector.extract_strided_slice %206 {offsets = [8, 0], sizes = [8, 8], strides = [1, 1]} : vector<16x32xf32> to vector<8x8xf32>
    %263 = vector.extract_strided_slice %206 {offsets = [8, 8], sizes = [8, 8], strides = [1, 1]} : vector<16x32xf32> to vector<8x8xf32>
    %264 = vector.extract_strided_slice %206 {offsets = [8, 16], sizes = [8, 8], strides = [1, 1]} : vector<16x32xf32> to vector<8x8xf32>
    %265 = vector.extract_strided_slice %206 {offsets = [8, 24], sizes = [8, 8], strides = [1, 1]} : vector<16x32xf32> to vector<8x8xf32>
    %266 = vector.shape_cast %262 : vector<8x8xf32> to vector<1x8x8xf32>
    %267 = vector.shape_cast %263 : vector<8x8xf32> to vector<1x8x8xf32>
    %268 = vector.shape_cast %264 : vector<8x8xf32> to vector<1x8x8xf32>
    %269 = vector.shape_cast %265 : vector<8x8xf32> to vector<1x8x8xf32>
    %270 = tpu.concatenate %266, %267, %268, %269 in 0 : vector<1x8x8xf32>, vector<1x8x8xf32>, vector<1x8x8xf32>, vector<1x8x8xf32> -> vector<4x8x8xf32>
    %271 = vector.extract_strided_slice %207 {offsets = [8, 0], sizes = [8, 8], strides = [1, 1]} : vector<16x32xf32> to vector<8x8xf32>
    %272 = vector.extract_strided_slice %207 {offsets = [8, 8], sizes = [8, 8], strides = [1, 1]} : vector<16x32xf32> to vector<8x8xf32>
    %273 = vector.extract_strided_slice %207 {offsets = [8, 16], sizes = [8, 8], strides = [1, 1]} : vector<16x32xf32> to vector<8x8xf32>
    %274 = vector.extract_strided_slice %207 {offsets = [8, 24], sizes = [8, 8], strides = [1, 1]} : vector<16x32xf32> to vector<8x8xf32>
    %275 = vector.shape_cast %271 : vector<8x8xf32> to vector<1x8x8xf32>
    %276 = vector.shape_cast %272 : vector<8x8xf32> to vector<1x8x8xf32>
    %277 = vector.shape_cast %273 : vector<8x8xf32> to vector<1x8x8xf32>
    %278 = vector.shape_cast %274 : vector<8x8xf32> to vector<1x8x8xf32>
    %279 = tpu.concatenate %275, %276, %277, %278 in 0 : vector<1x8x8xf32>, vector<1x8x8xf32>, vector<1x8x8xf32>, vector<1x8x8xf32> -> vector<4x8x8xf32>
    "tpu.trace_start"() <{level = 10 : i32, message = "hqd,hkd->hqk"}> : () -> ()
    %cst_94 = arith.constant dense<0.000000e+00> : vector<4x8x8xf32>
    %280 = tpu.matmul %261, %270, %cst_94 {dimension_numbers = #tpu.dot_dimension_numbers<[2], [2], [1], [1], [0, 0, 0, 1, 1, 1], [0], [0]>} : vector<4x8x8xf32>, vector<4x8x8xf32>, vector<4x8x8xf32> -> vector<4x8x8xf32>
    "tpu.trace_stop"() : () -> ()
    %281 = vector.extract_strided_slice %6 {offsets = [1, 0], sizes = [1, 8], strides = [1, 1]} : vector<2x8xf32> to vector<1x8xf32>
    %282 = vector.shape_cast %281 : vector<1x8xf32> to vector<1x1x8xf32>
    %283 = vector.broadcast %282 : vector<1x1x8xf32> to vector<4x8x8xf32>
    %284 = arith.addf %280, %283 : vector<4x8x8xf32>
    %cst_95 = arith.constant dense<0xFF800000> : vector<4x8xf32>
    %285 = vector.multi_reduction <maximumf>, %284, %cst_95 [2] : vector<4x8x8xf32> to vector<4x8xf32>
    %286 = vector.shape_cast %285 : vector<4x8xf32> to vector<4x8x1xf32>
    %287 = vector.broadcast %286 : vector<4x8x1xf32> to vector<4x8x8xf32>
    %288 = arith.subf %284, %287 : vector<4x8x8xf32>
    %289 = math.exp %288 : vector<4x8x8xf32>
    %cst_96 = arith.constant dense<0.000000e+00> : vector<4x8xf32>
    %290 = vector.multi_reduction <add>, %289, %cst_96 [2] : vector<4x8x8xf32> to vector<4x8xf32>
    %291 = vector.shape_cast %290 : vector<4x8xf32> to vector<4x8x1xf32>
    %292 = tpu.reciprocal %291 {approx = true} : vector<4x8x1xf32> -> vector<4x8x1xf32>
    %293 = vector.broadcast %292 : vector<4x8x1xf32> to vector<4x8x8xf32>
    %294 = arith.mulf %289, %293 : vector<4x8x8xf32>
    "tpu.trace_start"() <{level = 10 : i32, message = "hqk,hkd->hqd"}> : () -> ()
    %cst_97 = arith.constant dense<0.000000e+00> : vector<4x8x8xf32>
    %295 = tpu.matmul %294, %279, %cst_97 {dimension_numbers = #tpu.dot_dimension_numbers<[2], [1], [1], [2], [0, 0, 0, 1, 1, 2], [0], [0]>} : vector<4x8x8xf32>, vector<4x8x8xf32>, vector<4x8x8xf32> -> vector<4x8x8xf32>
    "tpu.trace_stop"() : () -> ()
    "tpu.trace_start"() <{level = 10 : i32, message = "hqd,hde->hqe"}> : () -> ()
    %cst_98 = arith.constant dense<0.000000e+00> : vector<4x8x32xf32>
    %296 = tpu.matmul %295, %199, %cst_98 {dimension_numbers = #tpu.dot_dimension_numbers<[2], [1], [1], [2], [0, 0, 0, 1, 1, 2], [0], [0]>} : vector<4x8x8xf32>, vector<4x8x32xf32>, vector<4x8x32xf32> -> vector<4x8x32xf32>
    "tpu.trace_stop"() : () -> ()
    %cst_99 = arith.constant dense<0.000000e+00> : vector<8x32xf32>
    %297 = vector.multi_reduction <add>, %296, %cst_99 [0] : vector<4x8x32xf32> to vector<8x32xf32>
    %298 = tpu.concatenate %252, %297 in 0 : vector<8x32xf32>, vector<8x32xf32> -> vector<16x32xf32>
    %299 = vector.broadcast %201 : vector<1x32xf32> to vector<16x32xf32>
    %300 = arith.addf %298, %299 : vector<16x32xf32>
    %301 = arith.addf %193, %300 : vector<16x32xf32>
    %c1_100 = arith.constant 1 : index
    %c0_101 = arith.constant 0 : index
    %c0_102 = arith.constant 0 : index
    %302 = vector.load %arg9[%c1_100, %c0_101, %c0_102] : memref<2x1x32xf32, #tpu.memory_space<vmem>>, vector<1x1x32xf32>
    %303 = vector.shape_cast %302 : vector<1x1x32xf32> to vector<1x32xf32>
    %c1_103 = arith.constant 1 : index
    %c0_104 = arith.constant 0 : index
    %c0_105 = arith.constant 0 : index
    %304 = vector.load %arg10[%c1_103, %c0_104, %c0_105] : memref<2x1x32xf32, #tpu.memory_space<vmem>>, vector<1x1x32xf32>
    %305 = vector.shape_cast %304 : vector<1x1x32xf32> to vector<1x32xf32>
    %cst_106 = arith.constant dense<0.000000e+00> : vector<16xf32>
    %306 = vector.multi_reduction <add>, %301, %cst_106 [1] : vector<16x32xf32> to vector<16xf32>
    %307 = vector.shape_cast %306 : vector<16xf32> to vector<16x1xf32>
    %cst_107 = arith.constant 3.200000e+01 : f32
    %308 = vector.broadcast %cst_107 : f32 to vector<16x1xf32>
    %309 = arith.divf %307, %308 : vector<16x1xf32>
    %310 = vector.broadcast %309 : vector<16x1xf32> to vector<16x32xf32>
    %311 = arith.subf %301, %310 : vector<16x32xf32>
    %312 = arith.mulf %311, %311 : vector<16x32xf32>
    %cst_108 = arith.constant dense<0.000000e+00> : vector<16xf32>
    %313 = vector.multi_reduction <add>, %312, %cst_108 [1] : vector<16x32xf32> to vector<16xf32>
    %314 = vector.shape_cast %313 : vector<16xf32> to vector<16x1xf32>
    %cst_109 = arith.constant 3.200000e+01 : f32
    %315 = vector.broadcast %cst_109 : f32 to vector<16x1xf32>
    %316 = arith.divf %314, %315 : vector<16x1xf32>
    %317 = vector.broadcast %309 : vector<16x1xf32> to vector<16x32xf32>
    %318 = arith.subf %301, %317 : vector<16x32xf32>
    %cst_110 = arith.constant 9.99999974E-6 : f32
    %319 = vector.broadcast %cst_110 : f32 to vector<16x1xf32>
    %320 = arith.addf %316, %319 : vector<16x1xf32>
    %321 = math.rsqrt %320 : vector<16x1xf32>
    %322 = vector.broadcast %321 : vector<16x1xf32> to vector<16x32xf32>
    %323 = arith.mulf %318, %322 : vector<16x32xf32>
    %324 = vector.broadcast %303 : vector<1x32xf32> to vector<16x32xf32>
    %325 = arith.mulf %323, %324 : vector<16x32xf32>
    %326 = vector.broadcast %305 : vector<1x32xf32> to vector<16x32xf32>
    %327 = arith.addf %325, %326 : vector<16x32xf32>
    %c1_111 = arith.constant 1 : index
    %c0_112 = arith.constant 0 : index
    %c0_113 = arith.constant 0 : index
    %328 = vector.load %arg11[%c1_111, %c0_112, %c0_113] : memref<2x32x64xf32, #tpu.memory_space<vmem>>, vector<1x32x64xf32>
    %329 = vector.shape_cast %328 : vector<1x32x64xf32> to vector<32x64xf32>
    %cst_114 = arith.constant dense<0.000000e+00> : vector<16x64xf32>
    %330 = tpu.matmul %327, %329, %cst_114 {dimension_numbers = #tpu.dot_dimension_numbers<[1], [0], [0], [1], [0, 0, 1, 1], [], []>} : vector<16x32xf32>, vector<32x64xf32>, vector<16x64xf32> -> vector<16x64xf32>
    %c1_115 = arith.constant 1 : index
    %c0_116 = arith.constant 0 : index
    %c0_117 = arith.constant 0 : index
    %331 = vector.load %arg12[%c1_115, %c0_116, %c0_117] : memref<2x1x64xf32, #tpu.memory_space<vmem>>, vector<1x1x64xf32>
    %332 = vector.shape_cast %331 : vector<1x1x64xf32> to vector<1x64xf32>
    %333 = vector.broadcast %332 : vector<1x64xf32> to vector<16x64xf32>
    %334 = arith.addf %330, %333 : vector<16x64xf32>
    %cst_118 = arith.constant 0.000000e+00 : f32
    %335 = vector.broadcast %cst_118 : f32 to vector<16x64xf32>
    %336 = arith.maximumf %334, %335 : vector<16x64xf32>
    %c1_119 = arith.constant 1 : index
    %c0_120 = arith.constant 0 : index
    %c0_121 = arith.constant 0 : index
    %337 = vector.load %arg13[%c1_119, %c0_120, %c0_121] : memref<2x64x32xf32, #tpu.memory_space<vmem>>, vector<1x64x32xf32>
    %338 = vector.shape_cast %337 : vector<1x64x32xf32> to vector<64x32xf32>
    %cst_122 = arith.constant dense<0.000000e+00> : vector<16x32xf32>
    %339 = tpu.matmul %336, %338, %cst_122 {dimension_numbers = #tpu.dot_dimension_numbers<[1], [0], [0], [1], [0, 0, 1, 1], [], []>} : vector<16x64xf32>, vector<64x32xf32>, vector<16x32xf32> -> vector<16x32xf32>
    %c1_123 = arith.constant 1 : index
    %c0_124 = arith.constant 0 : index
    %c0_125 = arith.constant 0 : index
    %340 = vector.load %arg14[%c1_123, %c0_124, %c0_125] : memref<2x1x32xf32, #tpu.memory_space<vmem>>, vector<1x1x32xf32>
    %341 = vector.shape_cast %340 : vector<1x1x32xf32> to vector<1x32xf32>
    %342 = vector.broadcast %341 : vector<1x32xf32> to vector<16x32xf32>
    %343 = arith.addf %339, %342 : vector<16x32xf32>
    %344 = arith.addf %327, %343 : vector<16x32xf32>
    %c1_126 = arith.constant 1 : index
    %c0_127 = arith.constant 0 : index
    %c0_128 = arith.constant 0 : index
    %345 = vector.load %arg15[%c1_126, %c0_127, %c0_128] : memref<2x1x32xf32, #tpu.memory_space<vmem>>, vector<1x1x32xf32>
    %346 = vector.shape_cast %345 : vector<1x1x32xf32> to vector<1x32xf32>
    %c1_129 = arith.constant 1 : index
    %c0_130 = arith.constant 0 : index
    %c0_131 = arith.constant 0 : index
    %347 = vector.load %arg16[%c1_129, %c0_130, %c0_131] : memref<2x1x32xf32, #tpu.memory_space<vmem>>, vector<1x1x32xf32>
    %348 = vector.shape_cast %347 : vector<1x1x32xf32> to vector<1x32xf32>
    %cst_132 = arith.constant dense<0.000000e+00> : vector<16xf32>
    %349 = vector.multi_reduction <add>, %344, %cst_132 [1] : vector<16x32xf32> to vector<16xf32>
    %350 = vector.shape_cast %349 : vector<16xf32> to vector<16x1xf32>
    %cst_133 = arith.constant 3.200000e+01 : f32
    %351 = vector.broadcast %cst_133 : f32 to vector<16x1xf32>
    %352 = arith.divf %350, %351 : vector<16x1xf32>
    %353 = vector.broadcast %352 : vector<16x1xf32> to vector<16x32xf32>
    %354 = arith.subf %344, %353 : vector<16x32xf32>
    %355 = arith.mulf %354, %354 : vector<16x32xf32>
    %cst_134 = arith.constant dense<0.000000e+00> : vector<16xf32>
    %356 = vector.multi_reduction <add>, %355, %cst_134 [1] : vector<16x32xf32> to vector<16xf32>
    %357 = vector.shape_cast %356 : vector<16xf32> to vector<16x1xf32>
    %cst_135 = arith.constant 3.200000e+01 : f32
    %358 = vector.broadcast %cst_135 : f32 to vector<16x1xf32>
    %359 = arith.divf %357, %358 : vector<16x1xf32>
    %360 = vector.broadcast %352 : vector<16x1xf32> to vector<16x32xf32>
    %361 = arith.subf %344, %360 : vector<16x32xf32>
    %cst_136 = arith.constant 9.99999974E-6 : f32
    %362 = vector.broadcast %cst_136 : f32 to vector<16x1xf32>
    %363 = arith.addf %359, %362 : vector<16x1xf32>
    %364 = math.rsqrt %363 : vector<16x1xf32>
    %365 = vector.broadcast %364 : vector<16x1xf32> to vector<16x32xf32>
    %366 = arith.mulf %361, %365 : vector<16x32xf32>
    %367 = vector.broadcast %346 : vector<1x32xf32> to vector<16x32xf32>
    %368 = arith.mulf %366, %367 : vector<16x32xf32>
    %369 = vector.broadcast %348 : vector<1x32xf32> to vector<16x32xf32>
    %370 = arith.addf %368, %369 : vector<16x32xf32>
    %371 = vector.shape_cast %370 : vector<16x32xf32> to vector<2x8x32xf32>
    %cst_137 = arith.constant dense<0.000000e+00> : vector<2x32xf32>
    %372 = vector.multi_reduction <add>, %371, %cst_137 [1] : vector<2x8x32xf32> to vector<2x32xf32>
    %cst_138 = arith.constant 8.000000e+00 : f32
    %373 = vector.broadcast %cst_138 : f32 to vector<2x32xf32>
    %374 = arith.divf %372, %373 : vector<2x32xf32>
    %c0_139 = arith.constant 0 : index
    %c0_140 = arith.constant 0 : index
    %375 = vector.load %arg17[%c0_139, %c0_140] : memref<32x5xf32, #tpu.memory_space<vmem>>, vector<32x5xf32>
    %cst_141 = arith.constant dense<0.000000e+00> : vector<2x5xf32>
    %376 = tpu.matmul %374, %375, %cst_141 {dimension_numbers = #tpu.dot_dimension_numbers<[1], [0], [0], [1], [0, 0, 1, 1], [], []>} : vector<2x32xf32>, vector<32x5xf32>, vector<2x5xf32> -> vector<2x5xf32>
    %c0_142 = arith.constant 0 : index
    %c0_143 = arith.constant 0 : index
    %377 = vector.load %arg18[%c0_142, %c0_143] : memref<1x5xf32, #tpu.memory_space<vmem>>, vector<1x5xf32>
    %378 = vector.broadcast %377 : vector<1x5xf32> to vector<2x5xf32>
    %379 = arith.addf %376, %378 : vector<2x5xf32>
    %c0_144 = arith.constant 0 : index
    %c0_145 = arith.constant 0 : index
    %380 = vector.load %arg19[%c0_144, %c0_145] : memref<2x5xf32, #tpu.memory_space<vmem>>, vector<2x5xf32>
    tpu.vector_store %arg19[%c0_144, %c0_145], %379 {strides = array<i32>} : memref<2x5xf32, #tpu.memory_space<vmem>>, vector<2x5xf32>,
    return
  }
}

</mosaic_0001>

<bundles_post_ra>
// kernel: transformer_classifier_forward.1
= control target key start
LH: loop header
LB: loop body
LE: loop exit
PB: predicated region body
PF: predicated region fallthrough
CT: control target
= control target key end

     0   :  { %s7069_s0 = inlined_call_operand.vmem [shape: f32[2,8,16], index: 0, kind: input, shape index: {}]   ;;  %s7070_s1 = inlined_call_operand.vmem [shape: s32[2,1], index: 1, kind: input, shape index: {}]   ;;  %s7071_s2 = inlined_call_operand.vmem [shape: f32[16,32], index: 2, kind: input, shape index: {}]   ;;  %s7072_s3 = inlined_call_operand.hbm [shape: f32[1,32], index: 3, kind: input, shape index: {}]   ;;  %s7073_s4 = inlined_call_operand.hbm [shape: f32[8,32], index: 4, kind: input, shape index: {}]   ;;  %s7074_s5 = inlined_call_operand.vmem [shape: f32[2,32,96], index: 5, kind: input, shape index: {}]   ;;  %s7075_s6 = inlined_call_operand.hbm [shape: f32[2,1,96], index: 6, kind: input, shape index: {}]   ;;  %s7076_s7 = inlined_call_operand.vmem [shape: f32[2,4,8,32], index: 7, kind: input, shape index: {}]   ;;  %s7077_s8 = inlined_call_operand.hbm [shape: f32[2,1,32], index: 8, kind: input, shape index: {}]   ;;  %s7078_s9 = inlined_call_operand.hbm [shape: f32[2,1,32], index: 9, kind: input, shape index: {}]   ;;  %s7079_s10 = inlined_call_operand.hbm [shape: f32[2,1,32], index: 10, kind: input, shape index: {}]   ;;  %s7080_s11 = inlined_call_operand.vmem [shape: f32[2,32,64], index: 11, kind: input, shape index: {}]   ;;  %s7081_s12 = inlined_call_operand.hbm [shape: f32[2,1,64], index: 12, kind: input, shape index: {}]   ;;  %s7082_s13 = inlined_call_operand.vmem [shape: f32[2,64,32], index: 13, kind: input, shape index: {}]   ;;  %s7083_s14 = inlined_call_operand.hbm [shape: f32[2,1,32], index: 14, kind: input, shape index: {}]   ;;  %s7084_s15 = inlined_call_operand.hbm [shape: f32[2,1,32], index: 15, kind: input, shape index: {}]   ;;  %s7085_s16 = inlined_call_operand.hbm [shape: f32[2,1,32], index: 16, kind: input, shape index: {}]   ;;  %s7086_s17 = inlined_call_operand.vmem [shape: f32[32,5], index: 17, kind: input, shape index: {}]   ;;  %s7087_s18 = inlined_call_operand.hbm [shape: f32[1,5], index: 18, kind: input, shape index: {}]   ;;  %s7088_s19 = inlined_call_operand.hbm [shape: f32[2,5], index: 19, kind: output, shape index: {}]  }
   0x1   :  { %7092 = sst [smem:[#allocation28_spill]] %s7069_s0 }
   0x2   :  { %7093 = sst [smem:[#allocation29_spill]] %s7070_s1 }
   0x3   :  { %7094 = sst [smem:[#allocation30_spill]] %s7071_s2 }
   0x4   :  { %7095 = sst [smem:[#allocation31_spill]] %s7072_s3 }
   0x5   :  { %24 = vsyncpa [#allocation3], 0 }
   0x6   :  { %25 = vsyncpa [#allocation6], 0 }
   0x7   :  { %26 = vsyncpa [#allocation9], 0 }
   0x8   :  { %27 = vsyncpa [#allocation12], 0 }
   0x9   :  { %28 = vsyncpa [#allocation15], 0 }
   0xa   :  { %29 = vsyncpa [#allocation18], 0 }
   0xb   :  { %30 = vsyncpa [#allocation4], 0  ;;  %s6129_s0 = smov [#allocation5]   ;;  %s5851_s1 = scalar_lea.hbm %s7073_s4, 128 }
   0xc   :  { %s53_s30 = sshll.u32 %s6129_s0, 4  ;;  %p5852_p0 = scmp.ne.s32.totalorder %s7073_s4, %s5851_s1  ;;  %s54_s30 = int_to_ptr.vmem [resolvable:$true] %s53_s30 }
   0xd   :  { %p5855_p1 = scmp.lt.u32.totalorder %s5851_s1, %s7073_s4 }
   0xf   :  { %p5857_p2 = pnand %p5855_p1, %p5852_p0 }
  0x11   :  { %5860 = shalt.err (!%p5857_p2)
}
  0x12   :  { %s5861_s25 = scalar_lea.vmem %s54_s30, 128  ;;  %p5866_p4 = scmp.lt.s32.totalorder %s54_s30, %s54_s30 }
  0x13   :  { %p5862_p3 = scmp.ne.s32.totalorder %s54_s30, %s5861_s25  ;;  %p5867_p5 = scmp.lt.s32.totalorder %s5861_s25, %s5861_s25 }
  0x15   :  { %p5868_p6 = por %p5867_p5, %p5866_p4 }
  0x17   :  { %p5869_p7 = pnand %p5868_p6, %p5862_p3 }
  0x19   :  { %5872 = shalt.err (!%p5869_p7)
}
  0x1a   :  { %56 = dma.hbm_to_vmem [thread:$0]  %s7073_s4, 128, %s54_s30, [#allocation6]  }
  0x1b   :  { %s6130_s27 = smov [#allocation8]   ;;  %s6131_s29 = smov [#allocation11]  }
  0x1c   :  { %s78_s28 = sshll.u32 %s6130_s27, 4  ;;  %s102_s0 = sshll.u32 %s6131_s29, 4  ;;  %s79_s28 = int_to_ptr.vmem [resolvable:$true] %s78_s28  ;;  %s103_s0 = int_to_ptr.vmem [resolvable:$true] %s102_s0 }
  0x1d   :  { %s5873_s1 = scalar_lea.hbm %s7077_s8, 32 }
  0x1e   :  { %p5874_p8 = scmp.ne.s32.totalorder %s7077_s8, %s5873_s1  ;;  %p5877_p9 = scmp.lt.u32.totalorder %s5873_s1, %s7077_s8 }
  0x20   :  { %p5879_p10 = pnand %p5877_p9, %p5874_p8 }
  0x22   :  { %5882 = shalt.err (!%p5879_p10)
}
  0x23   :  { %s5883_s4 = scalar_lea.vmem %s79_s28, 32  ;;  %p5888_p12 = scmp.lt.s32.totalorder %s79_s28, %s79_s28 }
  0x24   :  { %p5884_p11 = scmp.ne.s32.totalorder %s79_s28, %s5883_s4  ;;  %p5889_p13 = scmp.lt.s32.totalorder %s5883_s4, %s5883_s4 }
  0x26   :  { %p5890_p0 = por %p5889_p13, %p5888_p12 }
  0x28   :  { %p5891_p1 = pnand %p5890_p0, %p5884_p11 }
  0x2a   :  { %5894 = shalt.err (!%p5891_p1)
}
  0x2b   :  { %s6132_s30 = smov 16   ;;  %s6133_s25 = smov 1  }
  0x2c   :  { %84 = dma.hbm_to_vmem [thread:$0]  %s7077_s8, 32, %s79_s28, [#allocation9], %s6132_s30, %s6132_s30, %s6133_s25  }
  0x2d   :  { %s5895_s20 = scalar_lea.hbm %s7079_s10, 32 }
  0x2e   :  { %p5896_p2 = scmp.ne.s32.totalorder %s7079_s10, %s5895_s20  ;;  %p5899_p3 = scmp.lt.u32.totalorder %s5895_s20, %s7079_s10 }
  0x30   :  { %p5901_p4 = pnand %p5899_p3, %p5896_p2 }
  0x32   :  { %5904 = shalt.err (!%p5901_p4)
}
  0x33   :  { %s5905_s23 = scalar_lea.vmem %s103_s0, 32  ;;  %p5910_p6 = scmp.lt.s32.totalorder %s103_s0, %s103_s0 }
  0x34   :  { %p5906_p5 = scmp.ne.s32.totalorder %s103_s0, %s5905_s23  ;;  %p5911_p7 = scmp.lt.s32.totalorder %s5905_s23, %s5905_s23 }
  0x36   :  { %p5912_p8 = por %p5911_p7, %p5910_p6 }
  0x38   :  { %p5913_p9 = pnand %p5912_p8, %p5906_p5 }
  0x3a   :  { %5916 = shalt.err (!%p5913_p9)
}
  0x3b   :  { %108 = dma.hbm_to_vmem [thread:$0]  %s7079_s10, 32, %s103_s0, [#allocation12], %s6132_s30, %s6132_s30, %s6133_s25  }
  0x3c   :  { %s6134_s24 = smov [#allocation14]   ;;  %s6135_s3 = smov [#allocation17]  }
  0x3d   :  { %s130_s4 = sshll.u32 %s6134_s24, 4  ;;  %s154_s26 = sshll.u32 %s6135_s3, 4  ;;  %s131_s4 = int_to_ptr.vmem [resolvable:$true] %s130_s4  ;;  %s155_s26 = int_to_ptr.vmem [resolvable:$true] %s154_s26 }
  0x3e   :  { %s5917_s20 = scalar_lea.hbm %s7083_s14, 32 }
  0x3f   :  { %p5918_p10 = scmp.ne.s32.totalorder %s7083_s14, %s5917_s20  ;;  %p5921_p11 = scmp.lt.u32.totalorder %s5917_s20, %s7083_s14 }
  0x41   :  { %p5923_p12 = pnand %p5921_p11, %p5918_p10 }
  0x43   :  { %5926 = shalt.err (!%p5923_p12)
}
  0x44   :  { %s5927_s10 = scalar_lea.vmem %s131_s4, 32  ;;  %p5932_p0 = scmp.lt.s32.totalorder %s131_s4, %s131_s4 }
  0x45   :  { %p5928_p13 = scmp.ne.s32.totalorder %s131_s4, %s5927_s10  ;;  %p5933_p1 = scmp.lt.s32.totalorder %s5927_s10, %s5927_s10 }
  0x47   :  { %p5934_p2 = por %p5933_p1, %p5932_p0 }
  0x49   :  { %p5935_p3 = pnand %p5934_p2, %p5928_p13 }
  0x4b   :  { %5938 = shalt.err (!%p5935_p3)
}
  0x4c   :  { %136 = dma.hbm_to_vmem [thread:$0]  %s7083_s14, 32, %s131_s4, [#allocation15], %s6132_s30, %s6132_s30, %s6133_s25  }
  0x4d   :  { %s5939_s24 = scalar_lea.hbm %s7085_s16, 32 }
  0x4e   :  { %p5940_p4 = scmp.ne.s32.totalorder %s7085_s16, %s5939_s24  ;;  %p5943_p5 = scmp.lt.u32.totalorder %s5939_s24, %s7085_s16 }
  0x50   :  { %p5945_p6 = pnand %p5943_p5, %p5940_p4 }
  0x52   :  { %5948 = shalt.err (!%p5945_p6)
}
  0x53   :  { %s5949_s21 = scalar_lea.vmem %s155_s26, 32  ;;  %p5954_p8 = scmp.lt.s32.totalorder %s155_s26, %s155_s26 }
  0x54   :  { %p5950_p7 = scmp.ne.s32.totalorder %s155_s26, %s5949_s21  ;;  %p5955_p9 = scmp.lt.s32.totalorder %s5949_s21, %s5949_s21 }
  0x56   :  { %p5956_p10 = por %p5955_p9, %p5954_p8 }
  0x58   :  { %p5957_p11 = pnand %p5956_p10, %p5950_p7 }
  0x5a   :  { %5960 = shalt.err (!%p5957_p11)
}
  0x5b   :  { %160 = dma.hbm_to_vmem [thread:$0]  %s7085_s16, 32, %s155_s26, [#allocation18], %s6132_s30, %s6132_s30, %s6133_s25  }
  0x5c   :  { %s6136_s1 = smov [#allocation2]   ;;  %s6137_s2 = smov [#allocation7]  }
  0x5d   :  { %s43_s22 = sshll.u32 %s6136_s1, 4  ;;  %s64_s10 = sshll.u32 %s6137_s2, 4  ;;  %s44_s22 = int_to_ptr.vmem [resolvable:$true] %s43_s22  ;;  %s65_s10 = int_to_ptr.vmem [resolvable:$true] %s64_s10 }
  0x5e   :  { %s7096_s8 = sld [smem:[#allocation31_spill]] }
  0x64   :  { %s5961_s28 = scalar_lea.hbm %s7096_s8, 16 }
  0x65   :  { %p5962_p12 = scmp.ne.s32.totalorder %s7096_s8, %s5961_s28  ;;  %p5965_p13 = scmp.lt.u32.totalorder %s5961_s28, %s7096_s8 }
  0x67   :  { %p5967_p0 = pnand %p5965_p13, %p5962_p12 }
  0x69   :  { %5970 = shalt.err (!%p5967_p0)
}
  0x6a   :  { %s5971_s16 = scalar_lea.vmem %s44_s22, 16  ;;  %s5975_s26 = scalar_lea.vmem %s44_s22, 32 }
  0x6b   :  { %p5972_p1 = scmp.ne.s32.totalorder %s44_s22, %s5971_s16  ;;  %p5976_p2 = scmp.lt.s32.totalorder %s44_s22, %s44_s22 }
  0x6c   :  { %p5977_p3 = scmp.lt.s32.totalorder %s5975_s26, %s5971_s16 }
  0x6e   :  { %p5978_p4 = por %p5977_p3, %p5976_p2 }
  0x70   :  { %p5979_p5 = pnand %p5978_p4, %p5972_p1 }
  0x72   :  { %5982 = shalt.err (!%p5979_p5)
}
  0x73   :  { %46 = dma.hbm_to_vmem [thread:$0]  %s7096_s8, 16, %s44_s22, [#allocation3]  }
  0x74   :  { %s5983_s1 = scalar_lea.hbm %s7075_s6, 32 }
  0x75   :  { %p5984_p6 = scmp.ne.s32.totalorder %s7075_s6, %s5983_s1  ;;  %p5987_p7 = scmp.lt.u32.totalorder %s5983_s1, %s7075_s6 }
  0x77   :  { %p5989_p8 = pnand %p5987_p7, %p5984_p6 }
  0x79   :  { %5992 = shalt.err (!%p5989_p8)
}
  0x7a   :  { %s5993_s24 = scalar_lea.vmem %s65_s10, 32  ;;  %p5998_p10 = scmp.lt.s32.totalorder %s65_s10, %s65_s10 }
  0x7b   :  { %p5994_p9 = scmp.ne.s32.totalorder %s65_s10, %s5993_s24  ;;  %p5999_p11 = scmp.lt.s32.totalorder %s5993_s24, %s5993_s24 }
  0x7d   :  { %p6000_p12 = por %p5999_p11, %p5998_p10 }
  0x7f   :  { %p6001_p13 = pnand %p6000_p12, %p5994_p9 }
  0x81   :  { %6004 = shalt.err (!%p6001_p13)
}
  0x82   :  { %70 = dma.hbm_to_vmem [thread:$0]  %s7075_s6, 32, %s65_s10, [#allocation6], %s6132_s30, %s6132_s30, %s6133_s25  }
  0x83   :  { %s6138_s3 = smov [#allocation10]   ;;  %s6139_s29 = smov [#allocation13]  }
  0x84   :  { %s90_s27 = sshll.u32 %s6138_s3, 4  ;;  %s116_s16 = sshll.u32 %s6139_s29, 4  ;;  %s91_s27 = int_to_ptr.vmem [resolvable:$true] %s90_s27  ;;  %s117_s16 = int_to_ptr.vmem [resolvable:$true] %s116_s16 }
  0x85   :  { %s6005_s21 = scalar_lea.hbm %s7078_s9, 32 }
  0x86   :  { %p6006_p0 = scmp.ne.s32.totalorder %s7078_s9, %s6005_s21  ;;  %p6009_p1 = scmp.lt.u32.totalorder %s6005_s21, %s7078_s9 }
  0x88   :  { %p6011_p2 = pnand %p6009_p1, %p6006_p0 }
  0x8a   :  { %6014 = shalt.err (!%p6011_p2)
}
  0x8b   :  { %s6015_s6 = scalar_lea.vmem %s91_s27, 32  ;;  %p6020_p4 = scmp.lt.s32.totalorder %s91_s27, %s91_s27 }
  0x8c   :  { %p6016_p3 = scmp.ne.s32.totalorder %s91_s27, %s6015_s6  ;;  %p6021_p5 = scmp.lt.s32.totalorder %s6015_s6, %s6015_s6 }
  0x8e   :  { %p6022_p6 = por %p6021_p5, %p6020_p4 }
  0x90   :  { %p6023_p7 = pnand %p6022_p6, %p6016_p3 }
  0x92   :  { %6026 = shalt.err (!%p6023_p7)
}
  0x93   :  { %96 = dma.hbm_to_vmem [thread:$0]  %s7078_s9, 32, %s91_s27, [#allocation9], %s6132_s30, %s6132_s30, %s6133_s25  }
  0x94   :  { %s6027_s24 = scalar_lea.hbm %s7081_s12, 32 }
  0x95   :  { %p6028_p8 = scmp.ne.s32.totalorder %s7081_s12, %s6027_s24  ;;  %p6031_p9 = scmp.lt.u32.totalorder %s6027_s24, %s7081_s12 }
  0x97   :  { %p6033_p10 = pnand %p6031_p9, %p6028_p8 }
  0x99   :  { %6036 = shalt.err (!%p6033_p10)
}
  0x9a   :  { %s6037_s26 = scalar_lea.vmem %s117_s16, 32  ;;  %p6042_p12 = scmp.lt.s32.totalorder %s117_s16, %s117_s16 }
  0x9b   :  { %p6038_p11 = scmp.ne.s32.totalorder %s117_s16, %s6037_s26  ;;  %p6043_p13 = scmp.lt.s32.totalorder %s6037_s26, %s6037_s26 }
  0x9d   :  { %p6044_p0 = por %p6043_p13, %p6042_p12 }
  0x9f   :  { %p6045_p1 = pnand %p6044_p0, %p6038_p11 }
  0xa1   :  { %6048 = shalt.err (!%p6045_p1)
}
  0xa2   :  { %122 = dma.hbm_to_vmem [thread:$0]  %s7081_s12, 32, %s117_s16, [#allocation12], %s6132_s30, %s6132_s30, %s6133_s25  }
  0xa3   :  { %s6140_s20 = smov [#allocation16]   ;;  %s6141_s14 = smov [#allocation19]  }
  0xa4   :  { %s142_s21 = sshll.u32 %s6140_s20, 4  ;;  %s169_s4 = sshll.u32 %s6141_s14, 4  ;;  %s143_s21 = int_to_ptr.vmem [resolvable:$true] %s142_s21  ;;  %s170_s4 = int_to_ptr.vmem [resolvable:$true] %s169_s4 }
  0xa5   :  { %s6049_s6 = scalar_lea.hbm %s7084_s15, 32 }
  0xa6   :  { %p6050_p2 = scmp.ne.s32.totalorder %s7084_s15, %s6049_s6  ;;  %p6053_p3 = scmp.lt.u32.totalorder %s6049_s6, %s7084_s15 }
  0xa8   :  { %p6055_p4 = pnand %p6053_p3, %p6050_p2 }
  0xaa   :  { %6058 = shalt.err (!%p6055_p4)
}
  0xab   :  { %s6059_s12 = scalar_lea.vmem %s143_s21, 32  ;;  %p6064_p6 = scmp.lt.s32.totalorder %s143_s21, %s143_s21 }
  0xac   :  { %p6060_p5 = scmp.ne.s32.totalorder %s143_s21, %s6059_s12  ;;  %p6065_p7 = scmp.lt.s32.totalorder %s6059_s12, %s6059_s12 }
  0xae   :  { %p6066_p8 = por %p6065_p7, %p6064_p6 }
  0xb0   :  { %p6067_p9 = pnand %p6066_p8, %p6060_p5 }
  0xb2   :  { %6070 = shalt.err (!%p6067_p9)
}
  0xb3   :  { %148 = dma.hbm_to_vmem [thread:$0]  %s7084_s15, 32, %s143_s21, [#allocation15], %s6132_s30, %s6132_s30, %s6133_s25  }
  0xb4   :  { %s6071_s3 = scalar_lea.hbm %s7087_s18, 16 }
  0xb5   :  { %p6072_p10 = scmp.ne.s32.totalorder %s7087_s18, %s6071_s3  ;;  %p6075_p11 = scmp.lt.u32.totalorder %s6071_s3, %s7087_s18 }
  0xb7   :  { %p6077_p12 = pnand %p6075_p11, %p6072_p10 }
  0xb9   :  { %6080 = shalt.err (!%p6077_p12)
}
  0xba   :  { %s6081_s20 = scalar_lea.vmem %s170_s4, 16  ;;  %s6085_s14 = scalar_lea.vmem %s170_s4, 32 }
  0xbb   :  { %p6082_p13 = scmp.ne.s32.totalorder %s170_s4, %s6081_s20  ;;  %p6086_p0 = scmp.lt.s32.totalorder %s170_s4, %s170_s4 }
  0xbc   :  { %p6087_p1 = scmp.lt.s32.totalorder %s6085_s14, %s6081_s20 }
  0xbe   :  { %p6088_p2 = por %p6087_p1, %p6086_p0 }
  0xc0   :  { %p6089_p3 = pnand %p6088_p2, %p6082_p13 }
  0xc2   :  { %6092 = shalt.err (!%p6089_p3)
}
  0xc3   :  { %172 = dma.hbm_to_vmem [thread:$0]  %s7087_s18, 16, %s170_s4, [#allocation18]  }
  0xc4   :  { %6115 = dma.done.wait [#allocation3], 16  }
  0xc5   :  { %6116 = vsyncadd [#allocation3], 4294967280 }
  0xc6   :  { %6117 = dma.done.wait [#allocation6], 160  }
  0xc7   :  { %6118 = vsyncadd [#allocation6], 4294967136 }
  0xc8   :  { %6119 = dma.done.wait [#allocation9], 64  }
  0xc9   :  { %6120 = vsyncadd [#allocation9], 4294967232 }
  0xca   :  { %6121 = dma.done.wait [#allocation12], 64  }
  0xcb   :  { %6122 = vsyncadd [#allocation12], 4294967232 }
  0xcc   :  { %6123 = dma.done.wait [#allocation15], 64  }
  0xcd   :  { %6124 = vsyncadd [#allocation15], 4294967232 }
  0xce   :  { %6125 = dma.done.wait [#allocation18], 48  }
  0xcf   :  { %6126 = vsyncadd [#allocation18], 4294967248  ;;  %vm225_vm0 = vcmask 130048   ;;  %s7097_s1 = sld [smem:[#allocation30_spill]]  ;;  %s7098_s10 = sld [smem:[#allocation28_spill]]  ;;  %v310_v4 = vld [vmem:[%s7074_s5] sm:$0xff]  ;;  %v206_v34 = vlaneseq }
  0xd0   :  { %v311_v5 = vld [vmem:[%s7074_s5 + $0x8] sm:$0xff]  ;;  %v312_v8 = vld [vmem:[%s7074_s5 + $0x10] sm:$0xff]  ;;  %v313_v9 = vld [vmem:[%s7074_s5 + $0x18] sm:$0xff]  ;;  %vm326_vm1 = vcmask 261120   ;;  %v6142_v19 = vmov 0.0   ;;  %vm6143_vm2 = vmmov 0  }
  0xd1   :  { %v5676_v6 = vpack.c.bf16 %v311_v5, %v310_v4  ;;  %v5680_v10 = vpack.c.bf16 %v313_v9, %v312_v8  ;;  %v5066_v11 = vld [vmem:[#allocation2] ss:$0 sm:$0xff]  ;;  %v307_v14 = vld [vmem:[#allocation5] sm:$0xff]  ;;  %v5069_v20 = vld [vmem:[#allocation7] ss:$0 sm:$0xff]  ;;  %v6144_v21 = vmov 0  }
  0xd2   :  { %5769 = vset.pattern.permute.xlu1 %v6144_v21  ;;  %5770 = vset.pattern.permute.xlu0 %v6144_v21  ;;  %s6145_s26 = smov 104   ;;  %s6146_s9 = smov 120   ;;  %vm421_vm3 = vcmask 64512   ;;  %v207_v35 = vand.u32 127, %v206_v34  ;;  %v416_v36 = vshrl.u32 %v206_v34, 7  ;;  %vm2497_vm5 = vcmask 523264  }
  0xd3   :  { %5677 = vmatprep.subr.bf16.mxu1 %v5676_v6  ;;  %s6147_s27 = smov 96   ;;  %s6148_s20 = smov 112   ;;  %vm4970_vm6 = vcmask 1041409   ;;  %vm5044_vm7 = vcmask 33792  }
  0xd4   :  { %5679 = vmatpush3.bf16.msra.mxu1 %v5676_v6  ;;  %s7099_s30 = sld [smem:[#allocation29_spill]]  ;;  %v1380_v37 = vsub.s32 1, %v416_v36  ;;  %v417_v41 = vsub.s32 0, %v416_v36  ;;  %s6149_s25 = smov 64  }
  0xd5   :  { %v216_v0 = vld [vmem:[%s7097_s1] sm:$0xff]  ;;  %v217_v1 = vld [vmem:[%s7097_s1 + $0x8] sm:$0xff]  ;;  %5681 = vmatprep.subr.bf16.mxu1 %v5680_v10 }
  0xd6   :  { %v214_v2 = vld [vmem:[%s7098_s10] sm:$0xff]  ;;  %v5672_v3 = vpack.c.bf16 %v217_v1, %v216_v0  ;;  %v215_v7 = vld [vmem:[%s7098_s10 + $0x8] sm:$0xff] }
  0xd7   :  { %5336 = vmatprep.mubr.msk.f32.mxu0 %vm225_vm0, %v214_v2 }
  0xd8   :  { %5673 = vmatprep.subr.bf16.mxu0 %v5672_v3  ;;  %5683 = vmatpush3.bf16.msra.mxu1 %v5680_v10 }
  0xd9   :  { %5675 = vmatpush3.bf16.msra.mxu0 %v5672_v3  ;;  %5360 = vmatprep.subr.mxu1 %v6142_v19 }
  0xda   :  { %5350 = vmatprep.subr.mxu0 %v6142_v19  ;;  %v208_v30 = vld [vmem:[%s7099_s30] sm:$0x3] }
  0xdc   :  { %5337 = vmatmul.mubr.msk.f32.vlgmr.msra.gmra.mrb[0].mxu0 %vm225_vm0, %v215_v7 }
  0xdd   :  { %5352 = vmatprep.mubr.msk.f32.mxu0 %vm6143_vm2, %v6142_v19 }
 0x1af   :  { %v5338_v12 = vpop.f32.mrb[0].mxu0 }
 0x1b0   :  { %v304_v13 = vadd.f32 %v5338_v12, %v5066_v11  ;;  %v298_v15 = vpop.f32.mrb[1].mxu0 }
 0x1b1   :  { %v299_v16 = vadd.f32 %v5066_v11, %v298_v15 }
 0x1b2   :  { %v6434_v18 = vadd.f32 %v307_v14, %v304_v13 }
 0x1b3   :  { %v6432_v17 = vadd.f32 %v307_v14, %v299_v16 }
 0x1b5   :  { %5347 = vmatprep.mubr.msk.f32.mxu1 %vm326_vm1, %v6432_v17 }
 0x1b6   :  { %5348 = vmatmul.mubr.msk.f32.vlgmr.msra.gmra.mrb[0].mxu1 %vm326_vm1, %v6434_v18 }
 0x1b7   :  { %5362 = vmatprep.mubr.msk.f32.mxu1 %vm6143_vm2, %v6142_v19 }
 0x289   :  { %v5349_v22 = vpop.f32.mrb[0].mxu1 }
 0x28a   :  { %v6446_v23 = vadd.f32 %v5349_v22, %v5069_v20  ;;  %v399_v24 = vpop.f32.mrb[1].mxu1 }
 0x28b   :  { %v6448_v25 = vadd.f32 %v5069_v20, %v399_v24 }
 0x28d   :  { %413 = vrot.lane.b32.xlu1 %v6448_v25, %s6145_s26  ;;  %409 = vrot.lane.b32.xlu0 %v6448_v25, %s6146_s9 }
 0x291   :  { %419 = vrot.lane.b32.xlu1 %v6448_v25, %s6147_s27  ;;  %411 = vrot.lane.b32.xlu0 %v6448_v25, %s6148_s20 }
 0x2ff   :  { %v6458_v26 = vpop.permute.xlu1 %413  ;;  %v6460_v27 = vpop.permute.xlu0 %409 }
 0x300   :  { %496 = vrot.lane.b32.xlu0 %v6460_v27, %s6147_s27 }
 0x303   :  { %v420_v28 = vpop.permute.xlu1 %419  ;;  %v6464_v29 = vpop.permute.xlu0 %411 }
 0x304   :  { %5351 = vmatpush3.xpose.msk.msra.mxu0 %vm421_vm3, %v420_v28  ;;  %648 = vrot.lane.b32.xlu0 %v6458_v26, %s6147_s27 }
 0x305   :  { %572 = vrot.lane.b32.xlu1 %v6464_v29, %s6147_s27  ;;  %5355 = vmatprep.subr.mxu0 %v6142_v19 }
 0x307   :  { %5353 = vmatmul.mubr.msk.f32.vlgmr.msra.gmra.mrb[2].mxu0 %vm421_vm3, %v6448_v25 }
 0x308   :  { %5357 = vmatprep.mubr.msk.f32.mxu0 %vm6143_vm2, %v6142_v19 }
 0x309   :  { %210 = vperm.xlu1 %5769, %v208_v30  }
 0x372   :  { %v497_v31 = vpop.permute.xlu0 %496 }
 0x373   :  { %5356 = vmatpush3.xpose.msk.msra.mxu0 %vm421_vm3, %v497_v31 }
 0x374   :  { %5365 = vmatprep.subr.mxu0 %v6142_v19 }
 0x376   :  { %5358 = vmatmul.mubr.msk.f32.vlgmr.msra.gmra.mrb[4].mxu0 %vm421_vm3, %v6460_v27  ;;  %v649_v32 = vpop.permute.xlu0 %648 }
 0x377   :  { %v573_v33 = vpop.permute.xlu1 %572  ;;  %5366 = vmatpush3.xpose.msk.msra.mxu0 %vm421_vm3, %v649_v32  ;;  %5367 = vmatprep.mubr.msk.f32.mxu0 %vm6143_vm2, %v6142_v19 }
 0x378   :  { %5361 = vmatpush3.xpose.msk.msra.mxu1 %vm421_vm3, %v573_v33  ;;  %5375 = vmatprep.subr.mxu0 %v6142_v19 }
 0x379   :  { %5370 = vmatprep.subr.mxu1 %v6142_v19 }
 0x37a   :  { %5368 = vmatmul.mubr.msk.f32.vlgmr.msra.gmra.mrb[6].mxu0 %vm421_vm3, %v6458_v26 }
 0x37b   :  { %5363 = vmatmul.mubr.msk.f32.vlgmr.msra.gmra.mrb[2].mxu1 %vm421_vm3, %v6464_v29  ;;  %5377 = vmatprep.mubr.msk.f32.mxu0 %vm6143_vm2, %v6142_v19 }
 0x37c   :  { %5372 = vmatprep.mubr.msk.f32.mxu1 %vm6143_vm2, %v6142_v19 }
 0x388   :  { %v211_v38 = vpop.permute.xlu1 %210 }
 0x389   :  { %vm212_vm4 = vcmp.ge.s32.totalorder %v207_v35, %v211_v38  ;;  %v6546_v35 = vld [vmem:[%s7076_s7] sm:$0xff] }
 0x38a   :  { %v213_v39 = vsel %vm212_vm4, -1e+09, %v6142_v19 }
 0x38b   :  { %v6498_v40 = vrot.slane %v213_v39, %v1380_v37  ;;  %v6500_v42 = vrot.slane %v213_v39, %v417_v41  ;;  %v6568_v39 = vld [vmem:[%s7076_s7 + $0x8] sm:$0xff]  ;;  %v6575_v41 = vld [vmem:[%s7076_s7 + $0x10] sm:$0xff] }
 0x3da   :  { %v492_v43 = vpop.f32.mrb[2].mxu0 }
 0x3db   :  { %v493_v44 = vadd.f32 %v492_v43, %v6500_v42  ;;  %v5354_v45 = vpop.f32.mrb[3].mxu0 }
 0x3dc   :  { %v6585_v45 = vld [vmem:[%s7076_s7 + $0x18] sm:$0xff] }
 0x3dd   :  { %v724_v46 = vsel %vm421_vm3, %v493_v44, -inf }
 0x3de   :  { %725 = vmax.xlane.f32.xlu0 %v724_v46 }
 0x449   :  { %v568_v47 = vpop.f32.mrb[4].mxu0 }
 0x44a   :  { %v569_v48 = vadd.f32 %v568_v47, %v6500_v42  ;;  %v5359_v49 = vpop.f32.mrb[5].mxu0 }
 0x44c   :  { %v727_v50 = vsel %vm421_vm3, %v569_v48, -inf }
 0x44d   :  { %v720_v51 = vpop.f32.mrb[6].mxu0  ;;  %728 = vmax.xlane.f32.xlu1 %v727_v50 }
 0x44e   :  { %v644_v52 = vpop.f32.mrb[2].mxu1  ;;  %v5369_v53 = vpop.f32.mrb[7].mxu0  ;;  %v721_v56 = vadd.f32 %v720_v51, %v6500_v42 }
 0x44f   :  { %v645_v54 = vadd.f32 %v644_v52, %v6500_v42  ;;  %v5364_v55 = vpop.f32.mrb[3].mxu1 }
 0x450   :  { %v733_v58 = vsel %vm421_vm3, %v721_v56, -inf }
 0x451   :  { %v730_v57 = vsel %vm421_vm3, %v645_v54, -inf }
 0x452   :  { %731 = vmax.xlane.f32.xlu0 %v730_v57 }
 0x456   :  { %734 = vmax.xlane.f32.xlu0 %v733_v58 }
 0x45e   :  { %768 = vrot.lane.b32.xlu1 %v6448_v25, %s6149_s25 }
 0x46b   :  { %v726_v59 = vpop.xlane.xlu0 %725 }
 0x46c   :  { %v736_v60 = vsub.f32 %v493_v44, %v726_v59 }
 0x46e   :  { %v740_v61 = vmul.f32 1.442695, %v736_v60 }
 0x470   :  { %5771 = vpow2.f32 %v740_v61 }
 0x47a   :  { %v5772_v62 = vpop.eup %5771 }
 0x47b   :  { %v748_v63 = vsel %vm421_vm3, %v5772_v62, 0.0 }
 0x482   :  { %749 = vadd.xlane.f32.xlu1 %v748_v63 }
 0x4da   :  { %v729_v0 = vpop.xlane.xlu1 %728 }
 0x4db   :  { %v737_v1 = vsub.f32 %v569_v48, %v729_v0 }
 0x4dd   :  { %v742_v2 = vmul.f32 1.442695, %v737_v1 }
 0x4de   :  { %v769_v3 = vpop.permute.xlu1 %768 }
 0x4df   :  { %5773 = vpow2.f32 %v742_v2  ;;  %v732_v4 = vpop.xlane.xlu0 %731  ;;  %5371 = vmatpush3.msra.mxu1 %v769_v3 }
 0x4e0   :  { %v738_v5 = vsub.f32 %v645_v54, %v732_v4  ;;  %5380 = vmatprep.subr.mxu1 %v6142_v19 }
 0x4e2   :  { %v744_v6 = vmul.f32 1.442695, %v738_v5 }
 0x4e3   :  { %v735_v7 = vpop.xlane.xlu0 %734 }
 0x4e4   :  { %5775 = vpow2.f32 %v744_v6  ;;  %v739_v8 = vsub.f32 %v721_v56, %v735_v7 }
 0x4e6   :  { %v746_v9 = vmul.f32 1.442695, %v739_v8 }
 0x4e8   :  { %5777 = vpow2.f32 %v746_v9 }
 0x4e9   :  { %v5774_v10 = vpop.eup %5773 }
 0x4ea   :  { %v751_v11 = vsel %vm421_vm3, %v5774_v10, 0.0 }
 0x4eb   :  { %752 = vadd.xlane.f32.xlu0 %v751_v11 }
 0x4ee   :  { %v5776_v12 = vpop.eup %5775 }
 0x4ef   :  { %v754_v13 = vsel %vm421_vm3, %v5776_v12, 0.0 }
 0x4f0   :  { %755 = vadd.xlane.f32.xlu1 %v754_v13 }
 0x4f2   :  { %v5778_v14 = vpop.eup %5777 }
 0x4f3   :  { %v757_v15 = vsel %vm421_vm3, %v5778_v14, 0.0 }
 0x4f4   :  { %758 = vadd.xlane.f32.xlu0 %v757_v15 }
 0x501   :  { %920 = vrot.lane.b32.xlu1 %v6464_v29, %s6149_s25 }
 0x505   :  { %996 = vrot.lane.b32.xlu1 %v6458_v26, %s6149_s25 }
 0x509   :  { %1374 = vrot.lane.b32.xlu1 %v6446_v23, %s6148_s20 }
 0x50a   :  { %844 = vrot.lane.b32.xlu0 %v6460_v27, %s6149_s25 }
 0x50d   :  { %1382 = vrot.lane.b32.xlu1 %v6446_v23, %s6147_s27 }
 0x50e   :  { %1372 = vrot.lane.b32.xlu0 %v6446_v23, %s6146_s9 }
 0x50f   :  { %v750_v16 = vpop.xlane.xlu1 %749 }
 0x510   :  { %5779 = vrcp.f32 %v750_v16 }
 0x512   :  { %1376 = vrot.lane.b32.xlu0 %v6446_v23, %s6145_s26 }
 0x51a   :  { %v5780_v20 = vpop.eup %5779 }
 0x51b   :  { %v764_v21 = vmul.f32 %v5780_v20, %v5772_v62 }
 0x51d   :  { %5373 = vmatmul.mubr.msk.f32.vlgmr.msra.gmra.mrb[4].mxu1 %vm421_vm3, %v764_v21 }
 0x51e   :  { %5382 = vmatprep.mubr.msk.f32.mxu1 %vm6143_vm2, %v6142_v19 }
 0x578   :  { %v753_v22 = vpop.xlane.xlu0 %752 }
 0x579   :  { %5781 = vrcp.f32 %v753_v22 }
 0x57d   :  { %v756_v24 = vpop.xlane.xlu1 %755 }
 0x57e   :  { %5783 = vrcp.f32 %v756_v24 }
 0x581   :  { %v921_v25 = vpop.permute.xlu1 %920  ;;  %v759_v26 = vpop.xlane.xlu0 %758 }
 0x582   :  { %5785 = vrcp.f32 %v759_v26  ;;  %5381 = vmatpush3.msra.mxu1 %v921_v25 }
 0x583   :  { %v5782_v27 = vpop.eup %5781  ;;  %5390 = vmatprep.subr.mxu1 %v6142_v19 }
 0x584   :  { %v765_v28 = vmul.f32 %v5782_v27, %v5774_v10 }
 0x585   :  { %v997_v29 = vpop.permute.xlu1 %996  ;;  %v845_v30 = vpop.permute.xlu0 %844 }
 0x586   :  { %5376 = vmatpush3.msra.mxu0 %v845_v30 }
 0x587   :  { %5378 = vmatmul.mubr.msk.f32.vlgmr.msra.gmra.mrb[8].mxu0 %vm421_vm3, %v765_v28  ;;  %5385 = vmatprep.subr.mxu0 %v6142_v19 }
 0x588   :  { %v5784_v31 = vpop.eup %5783  ;;  %5386 = vmatpush3.msra.mxu0 %v997_v29  ;;  %5387 = vmatprep.mubr.msk.f32.mxu0 %vm6143_vm2, %v6142_v19 }
 0x589   :  { %v766_v32 = vmul.f32 %v5784_v31, %v5776_v12  ;;  %v6539_v33 = vpop.permute.xlu1 %1374  ;;  %v6541_v34 = vpop.permute.xlu0 %1372  ;;  %5395 = vmatprep.subr.mxu0 %v6142_v19 }
 0x58a   :  { %1534 = vrot.lane.b32.xlu1 %v6539_v33, %s6147_s27  ;;  %1458 = vrot.lane.b32.xlu0 %v6541_v34, %s6147_s27 }
 0x58b   :  { %5383 = vmatmul.mubr.msk.f32.vlgmr.msra.gmra.mrb[6].mxu1 %vm421_vm3, %v766_v32 }
 0x58c   :  { %v5786_v36 = vpop.eup %5785  ;;  %5391 = vmatpush3.msra.mxu1 %v6546_v35  ;;  %5392 = vmatprep.mubr.msk.f32.mxu1 %vm6143_vm2, %v6142_v19 }
 0x58d   :  { %v767_v37 = vmul.f32 %v5786_v36, %v5778_v14  ;;  %v6557_v38 = vpop.permute.xlu0 %1376  ;;  %5400 = vmatprep.subr.mxu1 %v6142_v19  ;;  %v1383_v49 = vpop.permute.xlu1 %1382 }
 0x58e   :  { %1610 = vrot.lane.b32.xlu0 %v6557_v38, %s6147_s27 }
 0x58f   :  { %5388 = vmatmul.mubr.msk.f32.vlgmr.msra.gmra.mrb[10].mxu0 %vm421_vm3, %v767_v37 }
 0x590   :  { %5397 = vmatprep.mubr.msk.f32.mxu0 %vm6143_vm2, %v6142_v19  ;;  %5396 = vmatpush3.msra.mxu0 %v6568_v39 }
 0x591   :  { %5405 = vmatprep.subr.mxu0 %v6142_v19 }
 0x5f0   :  { %v840_v43 = vpop.f32.mrb[4].mxu1 }
 0x5f1   :  { %v5374_v44 = vpop.f32.mrb[5].mxu1  ;;  %5393 = vmatmul.mubr.msk.f32.vlgmr.msra.gmra.mrb[8].mxu1 %vm421_vm3, %v840_v43 }
 0x5f2   :  { %5401 = vmatpush3.msra.mxu1 %v6575_v41  ;;  %5402 = vmatprep.mubr.msk.f32.mxu1 %vm6143_vm2, %v6142_v19 }
 0x5f3   :  { %5410 = vmatprep.subr.mxu1 %v6142_v19 }
 0x5fc   :  { %v1459_v51 = vpop.permute.xlu0 %1458  ;;  %v1535_v53 = vpop.permute.xlu1 %1534 }
 0x600   :  { %v1611_v55 = vpop.permute.xlu0 %1610 }
 0x65a   :  { %v916_v46 = vpop.f32.mrb[8].mxu0 }
 0x65b   :  { %v5379_v47 = vpop.f32.mrb[9].mxu0  ;;  %5398 = vmatmul.mubr.msk.f32.vlgmr.msra.gmra.mrb[12].mxu0 %vm421_vm3, %v916_v46 }
 0x65c   :  { %5406 = vmatpush3.msra.mxu0 %v6585_v45  ;;  %5407 = vmatprep.mubr.msk.f32.mxu0 %vm6143_vm2, %v6142_v19 }
 0x65d   :  { %5415 = vmatprep.subr.mxu0 %v6142_v19 }
 0x65e   :  { %v992_v48 = vpop.f32.mrb[6].mxu1 }
 0x65f   :  { %v5384_v50 = vpop.f32.mrb[7].mxu1  ;;  %5403 = vmatmul.mubr.msk.f32.vlgmr.msra.gmra.mrb[10].mxu1 %vm421_vm3, %v992_v48 }
 0x660   :  { %5411 = vmatpush3.xpose.msk.msra.mxu1 %vm421_vm3, %v1383_v49  ;;  %5412 = vmatprep.mubr.msk.f32.mxu1 %vm6143_vm2, %v6142_v19 }
 0x661   :  { %5420 = vmatprep.subr.mxu1 %v6142_v19 }
 0x662   :  { %v1068_v52 = vpop.f32.mrb[10].mxu0 }
 0x663   :  { %v5389_v54 = vpop.f32.mrb[11].mxu0  ;;  %5408 = vmatmul.mubr.msk.f32.vlgmr.msra.gmra.mrb[14].mxu0 %vm421_vm3, %v1068_v52  ;;  %5413 = vmatmul.mubr.msk.f32.vlgmr.msra.gmra.mrb[12].mxu1 %vm421_vm3, %v6446_v23 }
 0x664   :  { %5416 = vmatpush3.xpose.msk.msra.mxu0 %vm421_vm3, %v1459_v51  ;;  %5421 = vmatpush3.xpose.msk.msra.mxu1 %vm421_vm3, %v1535_v53 }
 0x665   :  { %5417 = vmatprep.mubr.msk.f32.mxu0 %vm6143_vm2, %v6142_v19  ;;  %5422 = vmatprep.mubr.msk.f32.mxu1 %vm6143_vm2, %v6142_v19 }
 0x666   :  { %5425 = vmatprep.subr.mxu0 %v6142_v19  ;;  %5430 = vmatprep.subr.mxu1 %v6142_v19 }
 0x667   :  { %5418 = vmatmul.mubr.msk.f32.vlgmr.msra.gmra.mrb[16].mxu0 %vm421_vm3, %v6541_v34  ;;  %5423 = vmatmul.mubr.msk.f32.vlgmr.msra.gmra.mrb[14].mxu1 %vm421_vm3, %v6539_v33 }
 0x668   :  { %5426 = vmatpush3.xpose.msk.msra.mxu0 %vm421_vm3, %v1611_v55  ;;  %5427 = vmatprep.mubr.msk.f32.mxu0 %vm6143_vm2, %v6142_v19 }
 0x669   :  { %5435 = vmatprep.subr.mxu0 %v6142_v19  ;;  %5432 = vmatprep.mubr.msk.f32.mxu1 %vm6143_vm2, %v6142_v19 }
 0x66b   :  { %5428 = vmatmul.mubr.msk.f32.vlgmr.msra.gmra.mrb[18].mxu0 %vm421_vm3, %v6557_v38 }
 0x66c   :  { %5437 = vmatprep.mubr.msk.f32.mxu0 %vm6143_vm2, %v6142_v19 }
 0x6c4   :  { %v1141_v56 = vpop.f32.mrb[8].mxu1 }
 0x6c5   :  { %v5394_v57 = vpop.f32.mrb[9].mxu1  ;;  %v1364_v59 = vsel %vm326_vm1, %v1141_v56, 0.0  ;;  %v6648_v56 = vld [vmem:[#allocation8] ss:$0 sm:$0xff] }
 0x72e   :  { %v1214_v58 = vpop.f32.mrb[12].mxu0 }
 0x72f   :  { %v1365_v60 = vsel %vm326_vm1, %v1214_v58, 0.0  ;;  %v5399_v61 = vpop.f32.mrb[13].mxu0 }
 0x730   :  { %v1366_v62 = vadd.f32 %v1365_v60, %v1364_v59 }
 0x732   :  { %v1287_v63 = vpop.f32.mrb[10].mxu1 }
 0x733   :  { %v1367_v0 = vsel %vm326_vm1, %v1287_v63, 0.0  ;;  %v5404_v1 = vpop.f32.mrb[11].mxu1 }
 0x734   :  { %v1368_v2 = vadd.f32 %v1367_v0, %v1366_v62 }
 0x736   :  { %v1360_v3 = vpop.f32.mrb[14].mxu0  ;;  %v1454_v4 = vpop.f32.mrb[12].mxu1 }
 0x737   :  { %v1369_v5 = vsel %vm326_vm1, %v1360_v3, 0.0  ;;  %v1455_v6 = vadd.f32 %v1454_v4, %v6498_v40  ;;  %v5409_v7 = vpop.f32.mrb[15].mxu0  ;;  %v5414_v8 = vpop.f32.mrb[13].mxu1 }
 0x738   :  { %v1370_v9 = vadd.f32 %v1369_v5, %v1368_v2 }
 0x739   :  { %v1686_v10 = vsel %vm421_vm3, %v1455_v6, -inf }
 0x73a   :  { %1687 = vmax.xlane.f32.xlu1 %v1686_v10  ;;  %v1530_v11 = vpop.f32.mrb[16].mxu0  ;;  %v1606_v12 = vpop.f32.mrb[14].mxu1  ;;  %v2339_v57 = vadd.f32 %v6648_v56, %v1370_v9 }
 0x73b   :  { %v1531_v13 = vadd.f32 %v1530_v11, %v6498_v40  ;;  %v5419_v14 = vpop.f32.mrb[17].mxu0  ;;  %v5424_v15 = vpop.f32.mrb[15].mxu1  ;;  %v1607_v16 = vadd.f32 %v1606_v12, %v6498_v40 }
 0x73c   :  { %v6652_v58 = vadd.f32 %v2339_v57, %v6432_v17 }
 0x73d   :  { %v1689_v20 = vsel %vm421_vm3, %v1531_v13, -inf  ;;  %v1692_v25 = vsel %vm421_vm3, %v1607_v16, -inf }
 0x73e   :  { %1690 = vmax.xlane.f32.xlu0 %v1689_v20  ;;  %v1682_v21 = vpop.f32.mrb[18].mxu0  ;;  %v2345_v59 = vsel %vm326_vm1, %v6652_v58, 0.0 }
 0x73f   :  { %v1683_v22 = vadd.f32 %v1682_v21, %v6498_v40  ;;  %v5429_v24 = vpop.f32.mrb[19].mxu0 }
 0x741   :  { %v1695_v26 = vsel %vm421_vm3, %v1683_v22, -inf }
 0x742   :  { %1693 = vmax.xlane.f32.xlu0 %v1692_v25  ;;  %1696 = vmax.xlane.f32.xlu1 %v1695_v26 }
 0x753   :  { %1806 = vrot.lane.b32.xlu1 %v6541_v34, %s6149_s25 }
 0x758   :  { %1730 = vrot.lane.b32.xlu0 %v6446_v23, %s6149_s25 }
 0x7c7   :  { %v1688_v27 = vpop.xlane.xlu1 %1687 }
 0x7c8   :  { %v1698_v28 = vsub.f32 %v1455_v6, %v1688_v27 }
 0x7ca   :  { %v1702_v29 = vmul.f32 1.442695, %v1698_v28 }
 0x7cb   :  { %v1691_v30 = vpop.xlane.xlu0 %1690 }
 0x7cc   :  { %5787 = vpow2.f32 %v1702_v29  ;;  %v1699_v31 = vsub.f32 %v1531_v13, %v1691_v30 }
 0x7ce   :  { %v1704_v32 = vmul.f32 1.442695, %v1699_v31 }
 0x7cf   :  { %v1697_v36 = vpop.xlane.xlu1 %1696  ;;  %v1694_v37 = vpop.xlane.xlu0 %1693 }
 0x7d0   :  { %5789 = vpow2.f32 %v1704_v32  ;;  %v1701_v43 = vsub.f32 %v1683_v22, %v1697_v36  ;;  %v1700_v44 = vsub.f32 %v1607_v16, %v1694_v37 }
 0x7d2   :  { %v1708_v46 = vmul.f32 1.442695, %v1701_v43  ;;  %v1706_v47 = vmul.f32 1.442695, %v1700_v44 }
 0x7d3   :  { %v1807_v48 = vpop.permute.xlu1 %1806  ;;  %v1731_v49 = vpop.permute.xlu0 %1730 }
 0x7d4   :  { %5791 = vpow2.f32 %v1708_v46  ;;  %5431 = vmatpush3.msra.mxu1 %v1731_v49  ;;  %5436 = vmatpush3.msra.mxu0 %v1807_v48 }
 0x7d5   :  { %5793 = vpow2.f32 %v1706_v47  ;;  %5440 = vmatprep.subr.mxu1 %v6142_v19  ;;  %5445 = vmatprep.subr.mxu0 %v6142_v19 }
 0x7d6   :  { %v5788_v23 = vpop.eup %5787 }
 0x7d7   :  { %v1710_v34 = vsel %vm421_vm3, %v5788_v23, 0.0 }
 0x7d8   :  { %1711 = vadd.xlane.f32.xlu0 %v1710_v34 }
 0x7da   :  { %v5790_v50 = vpop.eup %5789 }
 0x7db   :  { %v1713_v51 = vsel %vm421_vm3, %v5790_v50, 0.0 }
 0x7dc   :  { %1714 = vadd.xlane.f32.xlu1 %v1713_v51 }
 0x7de   :  { %v5792_v52 = vpop.eup %5791 }
 0x7df   :  { %v5794_v53 = vpop.eup %5793  ;;  %v1719_v54 = vsel %vm421_vm3, %v5792_v52, 0.0 }
 0x7e0   :  { %1720 = vadd.xlane.f32.xlu1 %v1719_v54  ;;  %v1716_v55 = vsel %vm421_vm3, %v5794_v53, 0.0 }
 0x7e1   :  { %1717 = vadd.xlane.f32.xlu0 %v1716_v55  ;;  %v5106_v55 = vld [vmem:[#allocation11] ss:$0 sm:$0xff] }
 0x7f1   :  { %1882 = vrot.lane.b32.xlu1 %v6539_v33, %s6149_s25 }
 0x7f7   :  { %1958 = vrot.lane.b32.xlu0 %v6557_v38, %s6149_s25 }
 0x815   :  { %2346 = vadd.xlane.f32.xlu1 %v2345_v59  ;;  %v2389_v59 = vld [vmem:[%s7080_s11 + $0x8] sm:$0xff] }
 0x865   :  { %v1712_v60 = vpop.xlane.xlu0 %1711 }
 0x866   :  { %5795 = vrcp.f32 %v1712_v60 }
 0x869   :  { %v1715_v61 = vpop.xlane.xlu1 %1714 }
 0x86a   :  { %5797 = vrcp.f32 %v1715_v61  ;;  %v2390_v61 = vld [vmem:[%s7080_s11 + $0x10] sm:$0xff] }
 0x86d   :  { %v1721_v62 = vpop.xlane.xlu1 %1720 }
 0x86e   :  { %5799 = vrcp.f32 %v1721_v62  ;;  %v1718_v33 = vpop.xlane.xlu0 %1717  ;;  %v2391_v62 = vld [vmem:[%s7080_s11 + $0x18] sm:$0xff] }
 0x86f   :  { %5801 = vrcp.f32 %v1718_v33  ;;  %v5688_v33 = vpack.c.bf16 %v2391_v62, %v2390_v61  ;;  %v5113_v61 = vld [vmem:[#allocation16] ss:$0 sm:$0xff] }
 0x870   :  { %v5796_v38 = vpop.eup %5795 }
 0x871   :  { %v1726_v63 = vmul.f32 %v5796_v38, %v5788_v23  ;;  %v1883_v0 = vpop.permute.xlu1 %1882  ;;  %v2482_v38 = vld [vmem:[%s7082_s13] sm:$0xff] }
 0x872   :  { %v1959_v2 = vpop.permute.xlu0 %1958 }
 0x873   :  { %5433 = vmatmul.mubr.msk.f32.vlgmr.msra.gmra.mrb[16].mxu1 %vm421_vm3, %v1726_v63  ;;  %v2483_v63 = vld [vmem:[%s7082_s13 + $0x8] sm:$0xff] }
 0x874   :  { %v5798_v1 = vpop.eup %5797  ;;  %5441 = vmatpush3.msra.mxu1 %v1883_v0  ;;  %5442 = vmatprep.mubr.msk.f32.mxu1 %vm6143_vm2, %v6142_v19  ;;  %v2484_v0 = vld [vmem:[%s7082_s13 + $0x10] sm:$0xff] }
 0x875   :  { %v1727_v17 = vmul.f32 %v5798_v1, %v5790_v50  ;;  %5450 = vmatprep.subr.mxu1 %v6142_v19  ;;  %v5692_v1 = vpack.c.bf16 %v2483_v63, %v2482_v38  ;;  %v5114_v63 = vld [vmem:[#allocation17] ss:$0 sm:$0xff] }
 0x877   :  { %5438 = vmatmul.mubr.msk.f32.vlgmr.msra.gmra.mrb[20].mxu0 %vm421_vm3, %v1727_v17  ;;  %v2485_v17 = vld [vmem:[%s7082_s13 + $0x18] sm:$0xff] }
 0x878   :  { %v5800_v3 = vpop.eup %5799  ;;  %5446 = vmatpush3.msra.mxu0 %v1959_v2  ;;  %5447 = vmatprep.mubr.msk.f32.mxu0 %vm6143_vm2, %v6142_v19  ;;  %v5696_v2 = vpack.c.bf16 %v2485_v17, %v2484_v0 }
 0x879   :  { %v5802_v4 = vpop.eup %5801  ;;  %v1729_v5 = vmul.f32 %v5800_v3, %v5792_v52  ;;  %5455 = vmatprep.subr.mxu0 %v6142_v19  ;;  %v2486_v3 = vld [vmem:[%s7082_s13 + $0x20] sm:$0xff] }
 0x87a   :  { %v1728_v6 = vmul.f32 %v5802_v4, %v5794_v53  ;;  %v2487_v4 = vld [vmem:[%s7082_s13 + $0x28] sm:$0xff] }
 0x87b   :  { %5448 = vmatmul.mubr.msk.f32.vlgmr.msra.gmra.mrb[22].mxu0 %vm421_vm3, %v1729_v5  ;;  %v5700_v5 = vpack.c.bf16 %v2487_v4, %v2486_v3  ;;  %v5123_v3 = vld [vmem:[#allocation7 + $0x1] ss:$0 sm:$0xff] }
 0x87c   :  { %5443 = vmatmul.mubr.msk.f32.vlgmr.msra.gmra.mrb[18].mxu1 %vm421_vm3, %v1728_v6  ;;  %5456 = vmatpush3.msra.mxu0 %v6568_v39 }
 0x87d   :  { %5451 = vmatpush3.msra.mxu1 %v6546_v35  ;;  %5452 = vmatprep.mubr.msk.f32.mxu1 %vm6143_vm2, %v6142_v19 }
 0x87e   :  { %5457 = vmatprep.mubr.msk.f32.mxu0 %vm6143_vm2, %v6142_v19  ;;  %5460 = vmatprep.subr.mxu1 %v6142_v19 }
 0x87f   :  { %5465 = vmatprep.subr.mxu0 %v6142_v19 }
 0x8a2   :  { %v2347_v21 = vpop.xlane.xlu1 %2346 }
 0x8a3   :  { %v2352_v28 = vmul.f32 0.03125, %v2347_v21 }
 0x8a5   :  { %v2354_v32 = vsub.f32 %v6652_v58, %v2352_v28  ;;  %v2388_v58 = vld [vmem:[%s7080_s11] sm:$0xff] }
 0x8a6   :  { %v5684_v60 = vpack.c.bf16 %v2389_v59, %v2388_v58 }
 0x8a7   :  { %v2356_v44 = vmul.f32 %v2354_v32, %v2354_v32 }
 0x8a9   :  { %v2358_v46 = vsel %vm326_vm1, %v2356_v44, 0.0 }
 0x946   :  { %v1802_v7 = vpop.f32.mrb[16].mxu1 }
 0x947   :  { %v5434_v8 = vpop.f32.mrb[17].mxu1  ;;  %5453 = vmatmul.mubr.msk.f32.vlgmr.msra.gmra.mrb[20].mxu1 %vm421_vm3, %v1802_v7 }
 0x948   :  { %5461 = vmatpush3.msra.mxu1 %v6575_v41  ;;  %5462 = vmatprep.mubr.msk.f32.mxu1 %vm6143_vm2, %v6142_v19 }
 0x949   :  { %5685 = vmatprep.subr.bf16.mxu1 %v5684_v60 }
 0x94a   :  { %v1878_v35 = vpop.f32.mrb[20].mxu0 }
 0x94b   :  { %v5439_v39 = vpop.f32.mrb[21].mxu0  ;;  %5458 = vmatmul.mubr.msk.f32.vlgmr.msra.gmra.mrb[24].mxu0 %vm421_vm3, %v1878_v35 }
 0x94c   :  { %5466 = vmatpush3.msra.mxu0 %v6585_v45  ;;  %5467 = vmatprep.mubr.msk.f32.mxu0 %vm6143_vm2, %v6142_v19 }
 0x94d   :  { %5693 = vmatprep.subr.bf16.mxu0 %v5692_v1 }
 0x94e   :  { %v2030_v9 = vpop.f32.mrb[22].mxu0 }
 0x94f   :  { %v1954_v10 = vpop.f32.mrb[18].mxu1  ;;  %v5449_v11 = vpop.f32.mrb[23].mxu0  ;;  %5468 = vmatmul.mubr.msk.f32.vlgmr.msra.gmra.mrb[26].mxu0 %vm421_vm3, %v2030_v9 }
 0x950   :  { %v5444_v12 = vpop.f32.mrb[19].mxu1  ;;  %5463 = vmatmul.mubr.msk.f32.vlgmr.msra.gmra.mrb[22].mxu1 %vm421_vm3, %v1954_v10  ;;  %5695 = vmatpush3.bf16.msra.mxu0 %v5692_v1  ;;  %v2488_v11 = vld [vmem:[%s7082_s13 + $0x30] sm:$0xff] }
 0x951   :  { %5687 = vmatpush3.bf16.msra.mxu1 %v5684_v60  ;;  %5697 = vmatprep.subr.bf16.mxu0 %v5696_v2  ;;  %v2489_v12 = vld [vmem:[%s7082_s13 + $0x38] sm:$0xff] }
 0x952   :  { %5689 = vmatprep.subr.bf16.mxu1 %v5688_v33 }
 0x954   :  { %5699 = vmatpush3.bf16.msra.mxu0 %v5696_v2 }
 0x955   :  { %5691 = vmatpush3.bf16.msra.mxu1 %v5688_v33  ;;  %5701 = vmatprep.subr.bf16.mxu0 %v5700_v5 }
 0x958   :  { %5703 = vmatpush3.bf16.msra.mxu0 %v5700_v5 }
 0xa1a   :  { %v2103_v41 = vpop.f32.mrb[20].mxu1 }
 0xa1b   :  { %v5454_v13 = vpop.f32.mrb[21].mxu1  ;;  %v2326_v15 = vsel %vm326_vm1, %v2103_v41, 0.0  ;;  %v5704_v41 = vpack.c.bf16 %v2489_v12, %v2488_v11 }
 0xa1c   :  { %v5107_v13 = vld [vmem:[#allocation13] ss:$0 sm:$0xff] }
 0xa1d   :  { %5705 = vmatprep.subr.bf16.mxu0 %v5704_v41 }
 0xa1e   :  { %v2176_v14 = vpop.f32.mrb[24].mxu0  ;;  %5707 = vmatpush3.bf16.msra.mxu0 %v5704_v41 }
 0xa1f   :  { %v2327_v16 = vsel %vm326_vm1, %v2176_v14, 0.0  ;;  %v5459_v20 = vpop.f32.mrb[25].mxu0  ;;  %5516 = vmatprep.subr.mxu0 %v6142_v19 }
 0xa20   :  { %v2328_v45 = vadd.f32 %v2327_v16, %v2326_v15 }
 0xa22   :  { %v2322_v22 = vpop.f32.mrb[26].mxu0 }
 0xa23   :  { %v2249_v24 = vpop.f32.mrb[22].mxu1  ;;  %v5469_v25 = vpop.f32.mrb[27].mxu0  ;;  %v2331_v30 = vsel %vm326_vm1, %v2322_v22, 0.0  ;;  %v5110_v22 = vld [vmem:[#allocation14] ss:$0 sm:$0xff] }
 0xa24   :  { %v2329_v26 = vsel %vm326_vm1, %v2249_v24, 0.0  ;;  %v5464_v27 = vpop.f32.mrb[23].mxu1 }
 0xa25   :  { %v2330_v29 = vadd.f32 %v2329_v26, %v2328_v45 }
 0xa27   :  { %v2332_v31 = vadd.f32 %v2331_v30, %v2330_v29 }
 0xa29   :  { %v2340_v36 = vadd.f32 %v6648_v56, %v2332_v31 }
 0xa2b   :  { %v2342_v37 = vadd.f32 %v2340_v36, %v6434_v18  ;;  %v5105_v18 = vld [vmem:[#allocation10] ss:$0 sm:$0xff] }
 0xa2d   :  { %v2348_v43 = vsel %vm326_vm1, %v2342_v37, 0.0 }
 0xa2e   :  { %2349 = vadd.xlane.f32.xlu0 %v2348_v43 }
 0xa32   :  { %2359 = vadd.xlane.f32.xlu0 %v2358_v46 }
 0xabb   :  { %v2350_v47 = vpop.xlane.xlu0 %2349 }
 0xabc   :  { %v2353_v48 = vmul.f32 0.03125, %v2350_v47 }
 0xabe   :  { %v2355_v49 = vsub.f32 %v2342_v37, %v2353_v48 }
 0xabf   :  { %v2360_v23 = vpop.xlane.xlu0 %2359 }
 0xac0   :  { %v2364_v34 = vmul.f32 0.03125, %v2360_v23  ;;  %v2357_v50 = vmul.f32 %v2355_v49, %v2355_v49 }
 0xac2   :  { %v2366_v51 = vadd.f32 1e-05, %v2364_v34  ;;  %v2361_v52 = vsel %vm326_vm1, %v2357_v50, 0.0  ;;  %v5115_v34 = vld [vmem:[%s7074_s5 + $0x20] sm:$0xff]  ;;  %v5116_v50 = vld [vmem:[%s7074_s5 + $0x28] sm:$0xff] }
 0xac3   :  { %2362 = vadd.xlane.f32.xlu1 %v2361_v52  ;;  %v5117_v52 = vld [vmem:[%s7074_s5 + $0x30] sm:$0xff] }
 0xac4   :  { %5803 = vrsqrt.f32 %v2366_v51  ;;  %v5708_v51 = vpack.c.bf16 %v5116_v50, %v5115_v34 }
 0xac6   :  { %5709 = vmatprep.subr.bf16.mxu1 %v5708_v51 }
 0xace   :  { %v5804_v53 = vpop.eup %5803 }
 0xacf   :  { %v2370_v54 = vmul.f32 %v5804_v53, %v2354_v32  ;;  %v5118_v53 = vld [vmem:[%s7074_s5 + $0x38] sm:$0xff] }
 0xad1   :  { %v2378_v56 = vmul.f32 %v5105_v18, %v2370_v54 }
 0xad3   :  { %v2386_v57 = vadd.f32 %v5106_v55, %v2378_v56 }
 0xad5   :  { %5478 = vmatprep.mubr.msk.f32.mxu1 %vm326_vm1, %v2386_v57 }
 0xb50   :  { %v2363_v6 = vpop.xlane.xlu1 %2362 }
 0xb51   :  { %v2365_v7 = vmul.f32 0.03125, %v2363_v6 }
 0xb53   :  { %v2367_v8 = vadd.f32 1e-05, %v2365_v7 }
 0xb55   :  { %5805 = vrsqrt.f32 %v2367_v8 }
 0xb5f   :  { %v5806_v35 = vpop.eup %5805 }
 0xb60   :  { %v2371_v39 = vmul.f32 %v5806_v35, %v2355_v49 }
 0xb62   :  { %v2379_v9 = vmul.f32 %v5105_v18, %v2371_v39  ;;  %v5712_v18 = vpack.c.bf16 %v5118_v53, %v5117_v52 }
 0xb64   :  { %v2387_v10 = vadd.f32 %v5106_v55, %v2379_v9 }
 0xb66   :  { %5479 = vmatmul.mubr.msk.f32.vlgmr.msra.gmra.mrb[24].mxu1 %vm326_vm1, %v2387_v10 }
 0xb67   :  { %5711 = vmatpush3.bf16.msra.mxu1 %v5708_v51 }
 0xb68   :  { %5713 = vmatprep.subr.bf16.mxu1 %v5712_v18 }
 0xb6b   :  { %5715 = vmatpush3.bf16.msra.mxu1 %v5712_v18 }
 0xb6c   :  { %5511 = vmatprep.subr.mxu1 %v6142_v19 }
 0xc39   :  { %v5480_v14 = vpop.f32.mrb[24].mxu1 }
 0xc3a   :  { %v2477_v15 = vadd.f32 %v5480_v14, %v5107_v13  ;;  %v2471_v16 = vpop.f32.mrb[25].mxu1 }
 0xc3b   :  { %v2472_v20 = vadd.f32 %v5107_v13, %v2471_v16 }
 0xc3c   :  { %v2481_v21 = vmax.f32 %v2477_v15, 0.0 }
 0xc3d   :  { %v2480_v45 = vmax.f32 %v2472_v20, 0.0 }
 0xc3f   :  { %5497 = vmatprep.mubr.msk.f32.mxu0 %vm2497_vm5, %v2480_v45 }
 0xc40   :  { %5498 = vmatmul.mubr.msk.f32.vlgmr.msra.gmra.mrb[28].mxu0 %vm2497_vm5, %v2481_v21 }
 0xc41   :  { %5518 = vmatprep.mubr.msk.f32.mxu0 %vm6143_vm2, %v6142_v19 }
 0xd13   :  { %v5499_v24 = vpop.f32.mrb[28].mxu0 }
 0xd14   :  { %v2576_v25 = vadd.f32 %v5499_v24, %v5110_v22  ;;  %v2570_v26 = vpop.f32.mrb[29].mxu0 }
 0xd15   :  { %v2571_v27 = vadd.f32 %v5110_v22, %v2570_v26 }
 0xd16   :  { %v2580_v28 = vadd.f32 %v2576_v25, %v2387_v10 }
 0xd17   :  { %v2579_v29 = vadd.f32 %v2571_v27, %v2386_v57 }
 0xd18   :  { %v2586_v30 = vsel %vm326_vm1, %v2580_v28, 0.0 }
 0xd19   :  { %2587 = vadd.xlane.f32.xlu1 %v2586_v30  ;;  %v2583_v31 = vsel %vm326_vm1, %v2579_v29, 0.0 }
 0xd1a   :  { %2584 = vadd.xlane.f32.xlu0 %v2583_v31 }
 0xda6   :  { %v2588_v32 = vpop.xlane.xlu1 %2587 }
 0xda7   :  { %v2590_v36 = vmul.f32 0.03125, %v2588_v32  ;;  %v2585_v37 = vpop.xlane.xlu0 %2584 }
 0xda8   :  { %v2589_v43 = vmul.f32 0.03125, %v2585_v37 }
 0xda9   :  { %v2592_v44 = vsub.f32 %v2580_v28, %v2590_v36 }
 0xdaa   :  { %v2591_v46 = vsub.f32 %v2579_v29, %v2589_v43 }
 0xdab   :  { %v2594_v47 = vmul.f32 %v2592_v44, %v2592_v44 }
 0xdac   :  { %v2593_v48 = vmul.f32 %v2591_v46, %v2591_v46 }
 0xdad   :  { %v2598_v49 = vsel %vm326_vm1, %v2594_v47, 0.0 }
 0xdae   :  { %2599 = vadd.xlane.f32.xlu1 %v2598_v49  ;;  %v2595_v23 = vsel %vm326_vm1, %v2593_v48, 0.0 }
 0xdaf   :  { %2596 = vadd.xlane.f32.xlu0 %v2595_v23 }
 0xe3b   :  { %v2600_v54 = vpop.xlane.xlu1 %2599 }
 0xe3c   :  { %v2602_v55 = vmul.f32 0.03125, %v2600_v54  ;;  %v2597_v56 = vpop.xlane.xlu0 %2596 }
 0xe3d   :  { %v2601_v57 = vmul.f32 0.03125, %v2597_v56 }
 0xe3e   :  { %v2604_v58 = vadd.f32 1e-05, %v2602_v55 }
 0xe3f   :  { %v2603_v59 = vadd.f32 1e-05, %v2601_v57 }
 0xe40   :  { %5807 = vrsqrt.f32 %v2604_v58 }
 0xe41   :  { %5809 = vrsqrt.f32 %v2603_v59 }
 0xe4a   :  { %v5808_v60 = vpop.eup %5807 }
 0xe4b   :  { %v5810_v62 = vpop.eup %5809  ;;  %v2608_v33 = vmul.f32 %v5808_v60, %v2592_v44 }
 0xe4c   :  { %v2607_v38 = vmul.f32 %v5810_v62, %v2591_v46 }
 0xe4d   :  { %v2616_v0 = vmul.f32 %v5113_v61, %v2608_v33 }
 0xe4e   :  { %v2615_v1 = vmul.f32 %v5113_v61, %v2607_v38 }
 0xe4f   :  { %v6756_v2 = vadd.f32 %v5114_v63, %v2616_v0 }
 0xe50   :  { %v6754_v17 = vadd.f32 %v5114_v63, %v2615_v1 }
 0xe52   :  { %5508 = vmatprep.mubr.msk.f32.mxu1 %vm326_vm1, %v6754_v17 }
 0xe53   :  { %5509 = vmatmul.mubr.msk.f32.vlgmr.msra.gmra.mrb[26].mxu1 %vm326_vm1, %v6756_v2 }
 0xe54   :  { %5513 = vmatprep.mubr.msk.f32.mxu1 %vm6143_vm2, %v6142_v19 }
 0xf26   :  { %v5510_v4 = vpop.f32.mrb[26].mxu1 }
 0xf27   :  { %v6764_v5 = vadd.f32 %v5510_v4, %v5123_v3  ;;  %v2717_v6 = vpop.f32.mrb[27].mxu1 }
 0xf28   :  { %v2718_v7 = vadd.f32 %v5123_v3, %v2717_v6 }
 0xf2a   :  { %2729 = vrot.lane.b32.xlu1 %v2718_v7, %s6148_s20  ;;  %2727 = vrot.lane.b32.xlu0 %v2718_v7, %s6146_s9 }
 0xf2e   :  { %2731 = vrot.lane.b32.xlu1 %v2718_v7, %s6145_s26  ;;  %2733 = vrot.lane.b32.xlu0 %v2718_v7, %s6147_s27 }
 0xf9c   :  { %v6770_v8 = vpop.permute.xlu1 %2729  ;;  %v6772_v35 = vpop.permute.xlu0 %2727 }
 0xf9d   :  { %2885 = vrot.lane.b32.xlu0 %v6770_v8, %s6147_s27  ;;  %2809 = vrot.lane.b32.xlu1 %v6772_v35, %s6147_s27 }
 0xfa0   :  { %v6778_v39 = vpop.permute.xlu1 %2731  ;;  %v2734_v9 = vpop.permute.xlu0 %2733 }
 0xfa1   :  { %2961 = vrot.lane.b32.xlu1 %v6778_v39, %s6147_s27  ;;  %5512 = vmatpush3.xpose.msk.msra.mxu1 %vm421_vm3, %v2734_v9 }
 0xfa2   :  { %5521 = vmatprep.subr.mxu1 %v6142_v19 }
 0xfa4   :  { %5514 = vmatmul.mubr.msk.f32.vlgmr.msra.gmra.mrb[28].mxu1 %vm421_vm3, %v2718_v7 }
 0xfa5   :  { %5523 = vmatprep.mubr.msk.f32.mxu1 %vm6143_vm2, %v6142_v19 }
0x100f   :  { %v2810_v10 = vpop.permute.xlu1 %2809  ;;  %v2886_v11 = vpop.permute.xlu0 %2885 }
0x1010   :  { %5517 = vmatpush3.xpose.msk.msra.mxu0 %vm421_vm3, %v2810_v10  ;;  %5522 = vmatpush3.xpose.msk.msra.mxu1 %vm421_vm3, %v2886_v11  ;;  %v6865_v10 = vld [vmem:[%s7076_s7 + $0x28] sm:$0xff]  ;;  %v6877_v11 = vld [vmem:[%s7076_s7 + $0x30] sm:$0xff] }
0x1011   :  { %5526 = vmatprep.subr.mxu0 %v6142_v19  ;;  %5531 = vmatprep.subr.mxu1 %v6142_v19 }
0x1013   :  { %5519 = vmatmul.mubr.msk.f32.vlgmr.msra.gmra.mrb[30].mxu0 %vm421_vm3, %v6772_v35  ;;  %v2962_v12 = vpop.permute.xlu1 %2961  ;;  %5524 = vmatmul.mubr.msk.f32.vlgmr.msra.gmra.mrb[30].mxu1 %vm421_vm3, %v6770_v8 }
0x1014   :  { %5527 = vmatpush3.xpose.msk.msra.mxu0 %vm421_vm3, %v2962_v12  ;;  %5528 = vmatprep.mubr.msk.f32.mxu0 %vm6143_vm2, %v6142_v19 }
0x1015   :  { %5533 = vmatprep.mubr.msk.f32.mxu1 %vm6143_vm2, %v6142_v19  ;;  %5536 = vmatprep.subr.mxu0 %v6142_v19 }
0x1017   :  { %5529 = vmatmul.mubr.msk.f32.vlgmr.msra.gmra.mrb[32].mxu0 %vm421_vm3, %v6778_v39 }
0x1018   :  { %5538 = vmatprep.mubr.msk.f32.mxu0 %vm6143_vm2, %v6142_v19 }
0x1077   :  { %v2805_v41 = vpop.f32.mrb[28].mxu1 }
0x1078   :  { %v2806_v13 = vadd.f32 %v2805_v41, %v6500_v42  ;;  %v5515_v14 = vpop.f32.mrb[29].mxu1 }
0x107a   :  { %v3037_v15 = vsel %vm421_vm3, %v2806_v13, -inf }
0x107b   :  { %3038 = vmax.xlane.f32.xlu0 %v3037_v15 }
0x10e6   :  { %v2881_v16 = vpop.f32.mrb[30].mxu0  ;;  %v2957_v20 = vpop.f32.mrb[30].mxu1 }
0x10e7   :  { %v2882_v45 = vadd.f32 %v2881_v16, %v6500_v42  ;;  %v2958_v21 = vadd.f32 %v2957_v20, %v6500_v42  ;;  %v5520_v22 = vpop.f32.mrb[31].mxu0  ;;  %v5525_v24 = vpop.f32.mrb[31].mxu1 }
0x10e9   :  { %v3040_v25 = vsel %vm421_vm3, %v2882_v45, -inf  ;;  %v3043_v26 = vsel %vm421_vm3, %v2958_v21, -inf }
0x10ea   :  { %3041 = vmax.xlane.f32.xlu1 %v3040_v25  ;;  %v3033_v27 = vpop.f32.mrb[32].mxu0  ;;  %3044 = vmax.xlane.f32.xlu0 %v3043_v26 }
0x10eb   :  { %v3034_v28 = vadd.f32 %v3033_v27, %v6500_v42  ;;  %v5530_v29 = vpop.f32.mrb[33].mxu0 }
0x10ed   :  { %v3046_v30 = vsel %vm421_vm3, %v3034_v28, -inf }
0x10ee   :  { %3047 = vmax.xlane.f32.xlu0 %v3046_v30 }
0x10fb   :  { %3081 = vrot.lane.b32.xlu1 %v2718_v7, %s6149_s25 }
0x1108   :  { %v3039_v31 = vpop.xlane.xlu0 %3038 }
0x1109   :  { %v3049_v32 = vsub.f32 %v2806_v13, %v3039_v31  ;;  %v6887_v13 = vld [vmem:[%s7076_s7 + $0x38] sm:$0xff] }
0x110b   :  { %v3053_v36 = vmul.f32 1.442695, %v3049_v32 }
0x110d   :  { %5811 = vpow2.f32 %v3053_v36 }
0x1117   :  { %v5812_v37 = vpop.eup %5811 }
0x1118   :  { %v3061_v43 = vsel %vm421_vm3, %v5812_v37, 0.0 }
0x111f   :  { %3062 = vadd.xlane.f32.xlu1 %v3061_v43 }
0x1177   :  { %v3042_v44 = vpop.xlane.xlu1 %3041  ;;  %v3045_v46 = vpop.xlane.xlu0 %3044 }
0x1178   :  { %v3050_v47 = vsub.f32 %v2882_v45, %v3042_v44  ;;  %v3051_v48 = vsub.f32 %v2958_v21, %v3045_v46 }
0x117a   :  { %v3055_v49 = vmul.f32 1.442695, %v3050_v47  ;;  %v3057_v42 = vmul.f32 1.442695, %v3051_v48 }
0x117b   :  { %v3082_v23 = vpop.permute.xlu1 %3081  ;;  %v3048_v34 = vpop.xlane.xlu0 %3047 }
0x117c   :  { %5813 = vpow2.f32 %v3055_v49  ;;  %v3052_v50 = vsub.f32 %v3034_v28, %v3048_v34  ;;  %5532 = vmatpush3.msra.mxu1 %v3082_v23 }
0x117d   :  { %5815 = vpow2.f32 %v3057_v42  ;;  %5541 = vmatprep.subr.mxu1 %v6142_v19 }
0x117e   :  { %v3059_v51 = vmul.f32 1.442695, %v3052_v50 }
0x1180   :  { %5817 = vpow2.f32 %v3059_v51 }
0x1186   :  { %v5814_v52 = vpop.eup %5813 }
0x1187   :  { %v5816_v53 = vpop.eup %5815  ;;  %v3064_v18 = vsel %vm421_vm3, %v5814_v52, 0.0 }
0x1188   :  { %3065 = vadd.xlane.f32.xlu0 %v3064_v18  ;;  %v3067_v54 = vsel %vm421_vm3, %v5816_v53, 0.0 }
0x1189   :  { %3068 = vadd.xlane.f32.xlu1 %v3067_v54 }
0x118a   :  { %v5818_v55 = vpop.eup %5817 }
0x118b   :  { %v3070_v56 = vsel %vm421_vm3, %v5818_v55, 0.0 }
0x118c   :  { %3071 = vadd.xlane.f32.xlu0 %v3070_v56 }
0x119a   :  { %3233 = vrot.lane.b32.xlu1 %v6770_v8, %s6149_s25  ;;  %v6847_v8 = vld [vmem:[%s7076_s7 + $0x20] sm:$0xff] }
0x119e   :  { %3309 = vrot.lane.b32.xlu1 %v6778_v39, %s6149_s25 }
0x11a2   :  { %3687 = vrot.lane.b32.xlu1 %v6764_v5, %s6148_s20  ;;  %3157 = vrot.lane.b32.xlu0 %v6772_v35, %s6149_s25 }
0x11a6   :  { %3691 = vrot.lane.b32.xlu1 %v6764_v5, %s6147_s27  ;;  %3685 = vrot.lane.b32.xlu0 %v6764_v5, %s6146_s9 }
0x11aa   :  { %3689 = vrot.lane.b32.xlu0 %v6764_v5, %s6145_s26 }
0x11ac   :  { %v3063_v57 = vpop.xlane.xlu1 %3062 }
0x11ad   :  { %5819 = vrcp.f32 %v3063_v57 }
0x11b7   :  { %v5820_v58 = vpop.eup %5819 }
0x11b8   :  { %v3077_v59 = vmul.f32 %v5820_v58, %v5812_v37 }
0x11ba   :  { %5534 = vmatmul.mubr.msk.f32.vlgmr.msra.gmra.mrb[32].mxu1 %vm421_vm3, %v3077_v59 }
0x11bb   :  { %5543 = vmatprep.mubr.msk.f32.mxu1 %vm6143_vm2, %v6142_v19 }
0x1215   :  { %v3066_v60 = vpop.xlane.xlu0 %3065 }
0x1216   :  { %v3069_v61 = vpop.xlane.xlu1 %3068  ;;  %5821 = vrcp.f32 %v3066_v60 }
0x1217   :  { %5823 = vrcp.f32 %v3069_v61 }
0x1219   :  { %v3072_v62 = vpop.xlane.xlu0 %3071 }
0x121a   :  { %v3234_v33 = vpop.permute.xlu1 %3233  ;;  %5825 = vrcp.f32 %v3072_v62 }
0x121b   :  { %5542 = vmatpush3.msra.mxu1 %v3234_v33 }
0x121c   :  { %5551 = vmatprep.subr.mxu1 %v6142_v19 }
0x121d   :  { %v3158_v38 = vpop.permute.xlu0 %3157 }
0x121e   :  { %v3310_v63 = vpop.permute.xlu1 %3309  ;;  %5537 = vmatpush3.msra.mxu0 %v3158_v38 }
0x121f   :  { %5546 = vmatprep.subr.mxu0 %v6142_v19 }
0x1220   :  { %v5822_v0 = vpop.eup %5821 }
0x1221   :  { %v5824_v1 = vpop.eup %5823  ;;  %v3078_v3 = vmul.f32 %v5822_v0, %v5814_v52  ;;  %v6838_v4 = vpop.permute.xlu0 %3685 }
0x1222   :  { %v3079_v6 = vmul.f32 %v5824_v1, %v5816_v53  ;;  %v6840_v7 = vpop.permute.xlu1 %3687  ;;  %3767 = vrot.lane.b32.xlu0 %v6838_v4, %s6147_s27 }
0x1223   :  { %3843 = vrot.lane.b32.xlu1 %v6840_v7, %s6147_s27  ;;  %5539 = vmatmul.mubr.msk.f32.vlgmr.msra.gmra.mrb[34].mxu0 %vm421_vm3, %v3078_v3 }
0x1224   :  { %v5826_v35 = vpop.eup %5825  ;;  %5544 = vmatmul.mubr.msk.f32.vlgmr.msra.gmra.mrb[34].mxu1 %vm421_vm3, %v3079_v6  ;;  %5547 = vmatpush3.msra.mxu0 %v3310_v63 }
0x1225   :  { %v3080_v39 = vmul.f32 %v5826_v35, %v5818_v55  ;;  %v6853_v9 = vpop.permute.xlu0 %3689  ;;  %5548 = vmatprep.mubr.msk.f32.mxu0 %vm6143_vm2, %v6142_v19  ;;  %5552 = vmatpush3.msra.mxu1 %v6847_v8 }
0x1226   :  { %3919 = vrot.lane.b32.xlu0 %v6853_v9, %s6147_s27  ;;  %5553 = vmatprep.mubr.msk.f32.mxu1 %vm6143_vm2, %v6142_v19  ;;  %v3692_v20 = vpop.permute.xlu1 %3691 }
0x1227   :  { %5549 = vmatmul.mubr.msk.f32.vlgmr.msra.gmra.mrb[36].mxu0 %vm421_vm3, %v3080_v39  ;;  %5561 = vmatprep.subr.mxu1 %v6142_v19 }
0x1228   :  { %5556 = vmatprep.subr.mxu0 %v6142_v19  ;;  %5558 = vmatprep.mubr.msk.f32.mxu0 %vm6143_vm2, %v6142_v19 }
0x1229   :  { %5557 = vmatpush3.msra.mxu0 %v6865_v10 }
0x122a   :  { %5566 = vmatprep.subr.mxu0 %v6142_v19 }
0x128d   :  { %v3153_v12 = vpop.f32.mrb[32].mxu1 }
0x128e   :  { %v5535_v41 = vpop.f32.mrb[33].mxu1  ;;  %5554 = vmatmul.mubr.msk.f32.vlgmr.msra.gmra.mrb[36].mxu1 %vm421_vm3, %v3153_v12 }
0x128f   :  { %5562 = vmatpush3.msra.mxu1 %v6877_v11  ;;  %5563 = vmatprep.mubr.msk.f32.mxu1 %vm6143_vm2, %v6142_v19 }
0x1290   :  { %5571 = vmatprep.subr.mxu1 %v6142_v19 }
0x1294   :  { %v3768_v25 = vpop.permute.xlu0 %3767 }
0x1295   :  { %v3844_v24 = vpop.permute.xlu1 %3843 }
0x1298   :  { %v3920_v26 = vpop.permute.xlu0 %3919 }
0x12f6   :  { %v3229_v14 = vpop.f32.mrb[34].mxu0 }
0x12f7   :  { %v3305_v15 = vpop.f32.mrb[34].mxu1  ;;  %v5540_v16 = vpop.f32.mrb[35].mxu0  ;;  %5559 = vmatmul.mubr.msk.f32.vlgmr.msra.gmra.mrb[38].mxu0 %vm421_vm3, %v3229_v14 }
0x12f8   :  { %v5545_v45 = vpop.f32.mrb[35].mxu1  ;;  %5564 = vmatmul.mubr.msk.f32.vlgmr.msra.gmra.mrb[38].mxu1 %vm421_vm3, %v3305_v15  ;;  %5567 = vmatpush3.msra.mxu0 %v6887_v13 }
0x12f9   :  { %5572 = vmatpush3.xpose.msk.msra.mxu1 %vm421_vm3, %v3692_v20  ;;  %5568 = vmatprep.mubr.msk.f32.mxu0 %vm6143_vm2, %v6142_v19 }
0x12fa   :  { %v3381_v21 = vpop.f32.mrb[36].mxu0  ;;  %5573 = vmatprep.mubr.msk.f32.mxu1 %vm6143_vm2, %v6142_v19  ;;  %5581 = vmatprep.subr.mxu1 %v6142_v19 }
0x12fb   :  { %v5550_v22 = vpop.f32.mrb[37].mxu0  ;;  %5569 = vmatmul.mubr.msk.f32.vlgmr.msra.gmra.mrb[40].mxu0 %vm421_vm3, %v3381_v21  ;;  %5576 = vmatprep.subr.mxu0 %v6142_v19 }
0x12fc   :  { %5574 = vmatmul.mubr.msk.f32.vlgmr.msra.gmra.mrb[40].mxu1 %vm421_vm3, %v6764_v5  ;;  %5578 = vmatprep.mubr.msk.f32.mxu0 %vm6143_vm2, %v6142_v19 }
0x12fd   :  { %5582 = vmatpush3.xpose.msk.msra.mxu1 %vm421_vm3, %v3844_v24  ;;  %5583 = vmatprep.mubr.msk.f32.mxu1 %vm6143_vm2, %v6142_v19 }
0x12fe   :  { %5591 = vmatprep.subr.mxu1 %v6142_v19 }
0x12ff   :  { %5577 = vmatpush3.xpose.msk.msra.mxu0 %vm421_vm3, %v3768_v25  ;;  %v6950_v25 = vld [vmem:[#allocation8 + $0x1] ss:$0 sm:$0xff] }
0x1300   :  { %5584 = vmatmul.mubr.msk.f32.vlgmr.msra.gmra.mrb[42].mxu1 %vm421_vm3, %v6840_v7  ;;  %5586 = vmatprep.subr.mxu0 %v6142_v19 }
0x1301   :  { %5593 = vmatprep.mubr.msk.f32.mxu1 %vm6143_vm2, %v6142_v19 }
0x1302   :  { %5579 = vmatmul.mubr.msk.f32.vlgmr.msra.gmra.mrb[42].mxu0 %vm421_vm3, %v6838_v4 }
0x1303   :  { %5587 = vmatpush3.xpose.msk.msra.mxu0 %vm421_vm3, %v3920_v26  ;;  %5588 = vmatprep.mubr.msk.f32.mxu0 %vm6143_vm2, %v6142_v19 }
0x1304   :  { %5596 = vmatprep.subr.mxu0 %v6142_v19 }
0x1306   :  { %5589 = vmatmul.mubr.msk.f32.vlgmr.msra.gmra.mrb[44].mxu0 %vm421_vm3, %v6853_v9 }
0x1307   :  { %5598 = vmatprep.mubr.msk.f32.mxu0 %vm6143_vm2, %v6142_v19 }
0x1361   :  { %v3454_v27 = vpop.f32.mrb[36].mxu1 }
0x1362   :  { %v5555_v28 = vpop.f32.mrb[37].mxu1  ;;  %v3677_v30 = vsel %vm326_vm1, %v3454_v27, 0.0 }
0x13ca   :  { %v3527_v29 = vpop.f32.mrb[38].mxu0 }
0x13cb   :  { %v3678_v31 = vsel %vm326_vm1, %v3527_v29, 0.0  ;;  %v3600_v32 = vpop.f32.mrb[38].mxu1  ;;  %v5560_v36 = vpop.f32.mrb[39].mxu0 }
0x13cc   :  { %v3679_v37 = vadd.f32 %v3678_v31, %v3677_v30  ;;  %v5565_v43 = vpop.f32.mrb[39].mxu1  ;;  %v3680_v44 = vsel %vm326_vm1, %v3600_v32, 0.0 }
0x13ce   :  { %v3681_v46 = vadd.f32 %v3680_v44, %v3679_v37  ;;  %v3673_v47 = vpop.f32.mrb[40].mxu0 }
0x13cf   :  { %v3682_v48 = vsel %vm326_vm1, %v3673_v47, 0.0  ;;  %v3763_v49 = vpop.f32.mrb[40].mxu1  ;;  %v5570_v42 = vpop.f32.mrb[41].mxu0 }
0x13d0   :  { %v3683_v23 = vadd.f32 %v3682_v48, %v3681_v46  ;;  %v3764_v34 = vadd.f32 %v3763_v49, %v6498_v40  ;;  %v5575_v50 = vpop.f32.mrb[41].mxu1 }
0x13d2   :  { %v3995_v51 = vsel %vm421_vm3, %v3764_v34, -inf  ;;  %v4648_v26 = vadd.f32 %v6950_v25, %v3683_v23 }
0x13d3   :  { %3996 = vmax.xlane.f32.xlu1 %v3995_v51  ;;  %v3915_v52 = vpop.f32.mrb[42].mxu1 }
0x13d4   :  { %v5585_v53 = vpop.f32.mrb[43].mxu1  ;;  %v3916_v56 = vadd.f32 %v3915_v52, %v6498_v40  ;;  %v6954_v27 = vadd.f32 %v4648_v26, %v6754_v17  ;;  %v5162_v26 = vld [vmem:[%s7080_s11 + $0x28] sm:$0xff] }
0x13d5   :  { %v3839_v18 = vpop.f32.mrb[42].mxu0 }
0x13d6   :  { %v3840_v54 = vadd.f32 %v3839_v18, %v6498_v40  ;;  %v5580_v55 = vpop.f32.mrb[43].mxu0  ;;  %v4001_v61 = vsel %vm421_vm3, %v3916_v56, -inf  ;;  %v4656_v28 = vsel %vm326_vm1, %v6954_v27, 0.0 }
0x13d8   :  { %v3998_v57 = vsel %vm421_vm3, %v3840_v54, -inf }
0x13d9   :  { %3999 = vmax.xlane.f32.xlu0 %v3998_v57  ;;  %v3991_v58 = vpop.f32.mrb[44].mxu0 }
0x13da   :  { %v3992_v59 = vadd.f32 %v3991_v58, %v6498_v40  ;;  %v5590_v60 = vpop.f32.mrb[45].mxu0 }
0x13dc   :  { %v4004_v62 = vsel %vm421_vm3, %v3992_v59, -inf }
0x13dd   :  { %4002 = vmax.xlane.f32.xlu0 %v4001_v61  ;;  %4005 = vmax.xlane.f32.xlu1 %v4004_v62 }
0x13ee   :  { %4115 = vrot.lane.b32.xlu1 %v6838_v4, %s6149_s25 }
0x13f3   :  { %4039 = vrot.lane.b32.xlu0 %v6764_v5, %s6149_s25 }
0x1460   :  { %v3997_v33 = vpop.xlane.xlu1 %3996 }
0x1461   :  { %v4007_v38 = vsub.f32 %v3764_v34, %v3997_v33 }
0x1463   :  { %v4011_v63 = vmul.f32 1.442695, %v4007_v38 }
0x1465   :  { %5827 = vpow2.f32 %v4011_v63 }
0x1466   :  { %v4000_v0 = vpop.xlane.xlu0 %3999 }
0x1467   :  { %v4008_v1 = vsub.f32 %v3840_v54, %v4000_v0 }
0x1469   :  { %v4013_v40 = vmul.f32 1.442695, %v4008_v1 }
0x146a   :  { %v4006_v3 = vpop.xlane.xlu1 %4005  ;;  %v4003_v6 = vpop.xlane.xlu0 %4002 }
0x146b   :  { %5829 = vpow2.f32 %v4013_v40  ;;  %v4010_v35 = vsub.f32 %v3992_v59, %v4006_v3  ;;  %v4009_v39 = vsub.f32 %v3916_v56, %v4003_v6 }
0x146d   :  { %v4017_v12 = vmul.f32 1.442695, %v4010_v35  ;;  %v4015_v41 = vmul.f32 1.442695, %v4009_v39 }
0x146e   :  { %v4116_v14 = vpop.permute.xlu1 %4115  ;;  %v4040_v15 = vpop.permute.xlu0 %4039 }
0x146f   :  { %v5828_v4 = vpop.eup %5827  ;;  %5831 = vpow2.f32 %v4017_v12  ;;  %5592 = vmatpush3.msra.mxu1 %v4040_v15  ;;  %5597 = vmatpush3.msra.mxu0 %v4116_v14 }
0x1470   :  { %5833 = vpow2.f32 %v4015_v41  ;;  %v4019_v5 = vsel %vm421_vm3, %v5828_v4, 0.0  ;;  %5601 = vmatprep.subr.mxu1 %v6142_v19  ;;  %5606 = vmatprep.subr.mxu0 %v6142_v19 }
0x1471   :  { %4020 = vadd.xlane.f32.xlu0 %v4019_v5 }
0x1475   :  { %v5830_v16 = vpop.eup %5829 }
0x1476   :  { %v4022_v20 = vsel %vm421_vm3, %v5830_v16, 0.0 }
0x1477   :  { %4023 = vadd.xlane.f32.xlu1 %v4022_v20 }
0x1479   :  { %v5832_v45 = vpop.eup %5831 }
0x147a   :  { %v5834_v21 = vpop.eup %5833  ;;  %v4028_v22 = vsel %vm421_vm3, %v5832_v45, 0.0 }
0x147b   :  { %4029 = vadd.xlane.f32.xlu1 %v4028_v22  ;;  %v4025_v24 = vsel %vm421_vm3, %v5834_v21, 0.0 }
0x147c   :  { %4026 = vadd.xlane.f32.xlu0 %v4025_v24 }
0x148c   :  { %4191 = vrot.lane.b32.xlu1 %v6840_v7, %s6149_s25 }
0x1492   :  { %4267 = vrot.lane.b32.xlu0 %v6853_v9, %s6149_s25 }
0x14b0   :  { %4657 = vadd.xlane.f32.xlu1 %v4656_v28  ;;  %v5163_v28 = vld [vmem:[%s7080_s11 + $0x30] sm:$0xff] }
0x14fe   :  { %v4021_v29 = vpop.xlane.xlu0 %4020 }
0x14ff   :  { %5835 = vrcp.f32 %v4021_v29  ;;  %v5164_v29 = vld [vmem:[%s7080_s11 + $0x38] sm:$0xff] }
0x1504   :  { %v4024_v30 = vpop.xlane.xlu1 %4023 }
0x1505   :  { %5837 = vrcp.f32 %v4024_v30  ;;  %v5720_v30 = vpack.c.bf16 %v5164_v29, %v5163_v28  ;;  %v5180_v29 = vld [vmem:[#allocation17 + $0x1] ss:$0 sm:$0xff] }
0x1508   :  { %v4030_v31 = vpop.xlane.xlu1 %4029 }
0x1509   :  { %v5836_v7 = vpop.eup %5835  ;;  %5839 = vrcp.f32 %v4030_v31  ;;  %v4027_v32 = vpop.xlane.xlu0 %4026  ;;  %v5168_v31 = vld [vmem:[%s7082_s13 + $0x40] sm:$0xff] }
0x150a   :  { %v4035_v9 = vmul.f32 %v5836_v7, %v5828_v4  ;;  %5841 = vrcp.f32 %v4027_v32  ;;  %v5169_v7 = vld [vmem:[%s7082_s13 + $0x48] sm:$0xff]  ;;  %v5170_v32 = vld [vmem:[%s7082_s13 + $0x50] sm:$0xff] }
0x150c   :  { %v4192_v36 = vpop.permute.xlu1 %4191  ;;  %5594 = vmatmul.mubr.msk.f32.vlgmr.msra.gmra.mrb[44].mxu1 %vm421_vm3, %v4035_v9  ;;  %v5724_v9 = vpack.c.bf16 %v5169_v7, %v5168_v31 }
0x150d   :  { %5602 = vmatpush3.msra.mxu1 %v4192_v36  ;;  %5603 = vmatprep.mubr.msk.f32.mxu1 %vm6143_vm2, %v6142_v19  ;;  %v4268_v43 = vpop.permute.xlu0 %4267  ;;  %v5171_v36 = vld [vmem:[%s7082_s13 + $0x58] sm:$0xff] }
0x150e   :  { %5611 = vmatprep.subr.mxu1 %v6142_v19 }
0x150f   :  { %v5838_v17 = vpop.eup %5837 }
0x1510   :  { %v4036_v37 = vmul.f32 %v5838_v17, %v5830_v16  ;;  %v5728_v17 = vpack.c.bf16 %v5171_v36, %v5170_v32 }
0x1512   :  { %5599 = vmatmul.mubr.msk.f32.vlgmr.msra.gmra.mrb[46].mxu0 %vm421_vm3, %v4036_v37  ;;  %v5172_v37 = vld [vmem:[%s7082_s13 + $0x60] sm:$0xff] }
0x1513   :  { %v5840_v44 = vpop.eup %5839  ;;  %5607 = vmatpush3.msra.mxu0 %v4268_v43  ;;  %5608 = vmatprep.mubr.msk.f32.mxu0 %vm6143_vm2, %v6142_v19  ;;  %v5173_v43 = vld [vmem:[%s7082_s13 + $0x68] sm:$0xff] }
0x1514   :  { %v5842_v46 = vpop.eup %5841  ;;  %v4038_v47 = vmul.f32 %v5840_v44, %v5832_v45  ;;  %5616 = vmatprep.subr.mxu0 %v6142_v19  ;;  %v5732_v44 = vpack.c.bf16 %v5173_v43, %v5172_v37 }
0x1515   :  { %v4037_v48 = vmul.f32 %v5842_v46, %v5834_v21  ;;  %v5160_v21 = vld [vmem:[#allocation11 + $0x1] ss:$0 sm:$0xff] }
0x1516   :  { %5609 = vmatmul.mubr.msk.f32.vlgmr.msra.gmra.mrb[48].mxu0 %vm421_vm3, %v4038_v47 }
0x1517   :  { %5604 = vmatmul.mubr.msk.f32.vlgmr.msra.gmra.mrb[46].mxu1 %vm421_vm3, %v4037_v48  ;;  %5617 = vmatpush3.msra.mxu0 %v6865_v10 }
0x1518   :  { %5612 = vmatpush3.msra.mxu1 %v6847_v8  ;;  %5613 = vmatprep.mubr.msk.f32.mxu1 %vm6143_vm2, %v6142_v19 }
0x1519   :  { %5618 = vmatprep.mubr.msk.f32.mxu0 %vm6143_vm2, %v6142_v19  ;;  %5621 = vmatprep.subr.mxu1 %v6142_v19 }
0x151a   :  { %5626 = vmatprep.subr.mxu0 %v6142_v19 }
0x153d   :  { %v4658_v56 = vpop.xlane.xlu1 %4657 }
0x153e   :  { %v4662_v62 = vmul.f32 0.03125, %v4658_v56 }
0x1540   :  { %v4664_v0 = vsub.f32 %v6954_v27, %v4662_v62 }
0x1542   :  { %v4666_v6 = vmul.f32 %v4664_v0, %v4664_v0 }
0x1544   :  { %v4668_v35 = vsel %vm326_vm1, %v4666_v6, 0.0 }
0x15df   :  { %v4111_v49 = vpop.f32.mrb[44].mxu1 }
0x15e0   :  { %v5595_v42 = vpop.f32.mrb[45].mxu1  ;;  %5614 = vmatmul.mubr.msk.f32.vlgmr.msra.gmra.mrb[48].mxu1 %vm421_vm3, %v4111_v49 }
0x15e1   :  { %5622 = vmatpush3.msra.mxu1 %v6877_v11  ;;  %5623 = vmatprep.mubr.msk.f32.mxu1 %vm6143_vm2, %v6142_v19 }
0x15e5   :  { %v4187_v8 = vpop.f32.mrb[46].mxu0 }
0x15e6   :  { %v5600_v10 = vpop.f32.mrb[47].mxu0  ;;  %5619 = vmatmul.mubr.msk.f32.vlgmr.msra.gmra.mrb[50].mxu0 %vm421_vm3, %v4187_v8 }
0x15e7   :  { %5627 = vmatpush3.msra.mxu0 %v6887_v13  ;;  %5628 = vmatprep.mubr.msk.f32.mxu0 %vm6143_vm2, %v6142_v19 }
0x15e8   :  { %5725 = vmatprep.subr.bf16.mxu0 %v5724_v9 }
0x15e9   :  { %v4339_v23 = vpop.f32.mrb[48].mxu0 }
0x15ea   :  { %v4263_v34 = vpop.f32.mrb[46].mxu1  ;;  %v5610_v50 = vpop.f32.mrb[49].mxu0  ;;  %5629 = vmatmul.mubr.msk.f32.vlgmr.msra.gmra.mrb[52].mxu0 %vm421_vm3, %v4339_v23  ;;  %v5174_v23 = vld [vmem:[%s7082_s13 + $0x70] sm:$0xff] }
0x15eb   :  { %v5605_v51 = vpop.f32.mrb[47].mxu1  ;;  %5624 = vmatmul.mubr.msk.f32.vlgmr.msra.gmra.mrb[50].mxu1 %vm421_vm3, %v4263_v34  ;;  %5727 = vmatpush3.bf16.msra.mxu0 %v5724_v9  ;;  %v5175_v34 = vld [vmem:[%s7082_s13 + $0x78] sm:$0xff] }
0x15ec   :  { %5729 = vmatprep.subr.bf16.mxu0 %v5728_v17  ;;  %v5736_v50 = vpack.c.bf16 %v5175_v34, %v5174_v23  ;;  %v5165_v51 = vld [vmem:[#allocation13 + $0x1] ss:$0 sm:$0xff] }
0x15ef   :  { %5731 = vmatpush3.bf16.msra.mxu0 %v5728_v17 }
0x15f0   :  { %5733 = vmatprep.subr.bf16.mxu0 %v5732_v44 }
0x15f3   :  { %5735 = vmatpush3.bf16.msra.mxu0 %v5732_v44 }
0x15f4   :  { %5737 = vmatprep.subr.bf16.mxu0 %v5736_v50 }
0x15f7   :  { %5739 = vmatpush3.bf16.msra.mxu0 %v5736_v50 }
0x16b3   :  { %v4412_v11 = vpop.f32.mrb[48].mxu1 }
0x16b4   :  { %v5615_v52 = vpop.f32.mrb[49].mxu1  ;;  %v4635_v18 = vsel %vm326_vm1, %v4412_v11, 0.0 }
0x16b9   :  { %v4485_v53 = vpop.f32.mrb[50].mxu0 }
0x16ba   :  { %v4636_v54 = vsel %vm326_vm1, %v4485_v53, 0.0  ;;  %v5620_v55 = vpop.f32.mrb[51].mxu0 }
0x16bb   :  { %v4637_v13 = vadd.f32 %v4636_v54, %v4635_v18 }
0x16bd   :  { %v4631_v57 = vpop.f32.mrb[52].mxu0 }
0x16be   :  { %v4558_v58 = vpop.f32.mrb[50].mxu1  ;;  %v5630_v59 = vpop.f32.mrb[53].mxu0  ;;  %v4640_v38 = vsel %vm326_vm1, %v4631_v57, 0.0 }
0x16bf   :  { %v4638_v60 = vsel %vm326_vm1, %v4558_v58, 0.0  ;;  %v5625_v61 = vpop.f32.mrb[51].mxu1 }
0x16c0   :  { %v4639_v33 = vadd.f32 %v4638_v60, %v4637_v13 }
0x16c2   :  { %v4641_v63 = vadd.f32 %v4640_v38, %v4639_v33 }
0x16c4   :  { %v4649_v1 = vadd.f32 %v6950_v25, %v4641_v63  ;;  %v5161_v25 = vld [vmem:[%s7080_s11 + $0x20] sm:$0xff] }
0x16c5   :  { %v5716_v27 = vpack.c.bf16 %v5162_v26, %v5161_v25  ;;  %v5179_v26 = vld [vmem:[#allocation16 + $0x1] ss:$0 sm:$0xff] }
0x16c6   :  { %v4651_v40 = vadd.f32 %v4649_v1, %v6756_v2  ;;  %v5159_v2 = vld [vmem:[#allocation10 + $0x1] ss:$0 sm:$0xff] }
0x16c7   :  { %5717 = vmatprep.subr.bf16.mxu1 %v5716_v27 }
0x16c8   :  { %v4659_v3 = vsel %vm326_vm1, %v4651_v40, 0.0  ;;  %5719 = vmatpush3.bf16.msra.mxu1 %v5716_v27 }
0x16c9   :  { %4660 = vadd.xlane.f32.xlu0 %v4659_v3  ;;  %5721 = vmatprep.subr.bf16.mxu1 %v5720_v30 }
0x16cc   :  { %5723 = vmatpush3.bf16.msra.mxu1 %v5720_v30 }
0x16cd   :  { %4669 = vadd.xlane.f32.xlu0 %v4668_v35 }
0x1756   :  { %v4661_v39 = vpop.xlane.xlu0 %4660 }
0x1757   :  { %v4663_v12 = vmul.f32 0.03125, %v4661_v39 }
0x1759   :  { %v4665_v41 = vsub.f32 %v4651_v40, %v4663_v12  ;;  %v4957_v12 = vld [vmem:[%s7086_s17] sm:$0xff] }
0x175a   :  { %v4670_v14 = vpop.xlane.xlu0 %4669 }
0x175b   :  { %v4674_v15 = vmul.f32 0.03125, %v4670_v14  ;;  %v4667_v4 = vmul.f32 %v4665_v41, %v4665_v41  ;;  %v4959_v14 = vld [vmem:[%s7086_s17 + $0x10] sm:$0xff] }
0x175d   :  { %v4676_v5 = vadd.f32 1e-05, %v4674_v15  ;;  %v4671_v16 = vsel %vm326_vm1, %v4667_v4, 0.0  ;;  %v6150_v15 = vmov 0.0|0.0  }
0x175e   :  { %4672 = vadd.xlane.f32.xlu1 %v4671_v16  ;;  %5740 = vmatprep.subr.bf16.mxu1 %v6150_v15 }
0x175f   :  { %5843 = vrsqrt.f32 %v4676_v5  ;;  %v4960_v5 = vld [vmem:[%s7086_s17 + $0x18] sm:$0xff] }
0x1760   :  { %v5744_v16 = vpack.c.bf16 %v4960_v5, %v4959_v14 }
0x1769   :  { %v5844_v20 = vpop.eup %5843 }
0x176a   :  { %v4680_v45 = vmul.f32 %v5844_v20, %v4664_v0 }
0x176c   :  { %v4688_v22 = vmul.f32 %v5159_v2, %v4680_v45 }
0x176e   :  { %v4696_v24 = vadd.f32 %v5160_v21, %v4688_v22 }
0x1770   :  { %5639 = vmatprep.mubr.msk.f32.mxu1 %vm326_vm1, %v4696_v24 }
0x17eb   :  { %v4673_v46 = vpop.xlane.xlu1 %4672 }
0x17ec   :  { %v4675_v47 = vmul.f32 0.03125, %v4673_v46 }
0x17ee   :  { %v4677_v48 = vadd.f32 1e-05, %v4675_v47 }
0x17f0   :  { %5845 = vrsqrt.f32 %v4677_v48 }
0x17fa   :  { %v5846_v49 = vpop.eup %5845 }
0x17fb   :  { %v4681_v42 = vmul.f32 %v5846_v49, %v4665_v41  ;;  %v4958_v41 = vld [vmem:[%s7086_s17 + $0x8] sm:$0xff]  ;;  %s6151_s17 = smov [#allocation20]  }
0x17fc   :  { %v5741_v4 = vpack.c.bf16 %v4958_v41, %v4957_v12  ;;  %s5052_s18 = sshll.u32 %s6151_s17, 4  ;;  %s5053_s18 = int_to_ptr.vmem [resolvable:$true] %s5052_s18 }
0x17fd   :  { %v4689_v8 = vmul.f32 %v5159_v2, %v4681_v42  ;;  %s6093_s4 = scalar_lea.vmem %s5053_s18, 32  ;;  %p6098_p5 = scmp.lt.s32.totalorder %s5053_s18, %s5053_s18 }
0x17fe   :  { %p6094_p4 = scmp.ne.s32.totalorder %s5053_s18, %s6093_s4  ;;  %p6099_p6 = scmp.lt.s32.totalorder %s6093_s4, %s6093_s4 }
0x17ff   :  { %v4697_v10 = vadd.f32 %v5160_v21, %v4689_v8 }
0x1800   :  { %p6100_p7 = por %p6099_p6, %p6098_p5 }
0x1801   :  { %5640 = vmatmul.mubr.msk.f32.vlgmr.msra.gmra.mrb[52].mxu1 %vm326_vm1, %v4697_v10 }
0x1802   :  { %5669 = vmatprep.mubr.msk.f32.mxu1 %vm6143_vm2, %v6142_v19  ;;  %v5176_v19 = vld [vmem:[#allocation14 + $0x1] ss:$0 sm:$0xff]  ;;  %5742 = vmatpush3.bf16.msra.mxu1 %v5741_v4  ;;  %p6101_p8 = pnand %p6100_p7, %p6094_p4 }
0x1803   :  { %5743 = vmatprep.subr.bf16.mxu1 %v6150_v15 }
0x1806   :  { %5745 = vmatpush3.bf16.msra.mxu1 %v5744_v16 }
0x18d4   :  { %v5641_v11 = vpop.f32.mrb[52].mxu1 }
0x18d5   :  { %v4789_v52 = vadd.f32 %v5641_v11, %v5165_v51  ;;  %v4783_v53 = vpop.f32.mrb[53].mxu1 }
0x18d6   :  { %v4784_v18 = vadd.f32 %v5165_v51, %v4783_v53 }
0x18d7   :  { %v4793_v55 = vmax.f32 %v4789_v52, 0.0  ;;  %v5181_v52 = vld [vmem:[#allocation19] ss:$0 sm:$0xff] }
0x18d8   :  { %v4792_v54 = vmax.f32 %v4784_v18, 0.0 }
0x18da   :  { %5658 = vmatprep.mubr.msk.f32.mxu0 %vm2497_vm5, %v4792_v54 }
0x18db   :  { %5659 = vmatmul.mubr.msk.f32.vlgmr.msra.gmra.mrb[54].mxu0 %vm2497_vm5, %v4793_v55 }
0x19ae   :  { %v5660_v13 = vpop.f32.mrb[54].mxu0 }
0x19af   :  { %v4889_v56 = vadd.f32 %v5660_v13, %v5176_v19  ;;  %v4883_v57 = vpop.f32.mrb[55].mxu0 }
0x19b0   :  { %v4884_v58 = vadd.f32 %v5176_v19, %v4883_v57 }
0x19b1   :  { %v4893_v59 = vadd.f32 %v4889_v56, %v4697_v10 }
0x19b2   :  { %v4892_v60 = vadd.f32 %v4884_v58, %v4696_v24 }
0x19b3   :  { %v4901_v61 = vsel %vm326_vm1, %v4893_v59, 0.0 }
0x19b4   :  { %4902 = vadd.xlane.f32.xlu1 %v4901_v61  ;;  %v4898_v62 = vsel %vm326_vm1, %v4892_v60, 0.0 }
0x19b5   :  { %4899 = vadd.xlane.f32.xlu0 %v4898_v62 }
0x1a41   :  { %v4903_v33 = vpop.xlane.xlu1 %4902 }
0x1a42   :  { %v4905_v38 = vmul.f32 0.03125, %v4903_v33  ;;  %v4900_v63 = vpop.xlane.xlu0 %4899 }
0x1a43   :  { %v4904_v0 = vmul.f32 0.03125, %v4900_v63 }
0x1a44   :  { %v4907_v1 = vsub.f32 %v4893_v59, %v4905_v38 }
0x1a45   :  { %v4906_v40 = vsub.f32 %v4892_v60, %v4904_v0 }
0x1a46   :  { %v4909_v3 = vmul.f32 %v4907_v1, %v4907_v1 }
0x1a47   :  { %v4908_v6 = vmul.f32 %v4906_v40, %v4906_v40 }
0x1a48   :  { %v4913_v35 = vsel %vm326_vm1, %v4909_v3, 0.0 }
0x1a49   :  { %4914 = vadd.xlane.f32.xlu1 %v4913_v35  ;;  %v4910_v39 = vsel %vm326_vm1, %v4908_v6, 0.0 }
0x1a4a   :  { %4911 = vadd.xlane.f32.xlu0 %v4910_v39 }
0x1ad6   :  { %v4915_v20 = vpop.xlane.xlu1 %4914 }
0x1ad7   :  { %v4917_v2 = vmul.f32 0.03125, %v4915_v20  ;;  %v4912_v45 = vpop.xlane.xlu0 %4911 }
0x1ad8   :  { %v4916_v21 = vmul.f32 0.03125, %v4912_v45 }
0x1ad9   :  { %v4919_v22 = vadd.f32 1e-05, %v4917_v2 }
0x1ada   :  { %v4918_v24 = vadd.f32 1e-05, %v4916_v21 }
0x1adb   :  { %5847 = vrsqrt.f32 %v4919_v22 }
0x1adc   :  { %5849 = vrsqrt.f32 %v4918_v24 }
0x1ae5   :  { %v5848_v25 = vpop.eup %5847 }
0x1ae6   :  { %v5850_v27 = vpop.eup %5849  ;;  %v4923_v28 = vmul.f32 %v5848_v25, %v4907_v1 }
0x1ae7   :  { %v4922_v30 = vmul.f32 %v5850_v27, %v4906_v40 }
0x1ae8   :  { %v4931_v31 = vmul.f32 %v5179_v26, %v4923_v28 }
0x1ae9   :  { %v4930_v7 = vmul.f32 %v5179_v26, %v4922_v30 }
0x1aea   :  { %v4939_v32 = vadd.f32 %v5180_v29, %v4931_v31 }
0x1aeb   :  { %v4938_v9 = vadd.f32 %v5180_v29, %v4930_v7 }
0x1aec   :  { %v4947_v36 = vsel %vm326_vm1, %v4939_v32, 0.0 }
0x1aed   :  { %v4940_v17 = vsel %vm326_vm1, %v4938_v9, 0.0  ;;  %v4948_v37 = vrot.slane %v4947_v36, 4 }
0x1aee   :  { %v4941_v43 = vrot.slane %v4940_v17, 4 }
0x1aef   :  { %v4949_v44 = vadd.f32 %v4948_v37, %v4947_v36 }
0x1af0   :  { %v4942_v46 = vadd.f32 %v4941_v43, %v4940_v17 }
0x1af1   :  { %v4950_v47 = vrot.slane %v4949_v44, 2 }
0x1af2   :  { %v4943_v48 = vrot.slane %v4942_v46, 2 }
0x1af3   :  { %v4951_v49 = vadd.f32 %v4950_v47, %v4949_v44 }
0x1af4   :  { %v4944_v42 = vadd.f32 %v4943_v48, %v4942_v46 }
0x1af5   :  { %v4952_v8 = vrot.slane %v4951_v49, 1 }
0x1af6   :  { %v4945_v10 = vrot.slane %v4944_v42, 1 }
0x1af7   :  { %v4953_v23 = vadd.f32 %v4952_v8, %v4951_v49 }
0x1af8   :  { %v4946_v34 = vadd.f32 %v4945_v10, %v4944_v42 }
0x1af9   :  { %v4956_v50 = vmul.f32 0.125, %v4953_v23 }
0x1afa   :  { %v4955_v51 = vmul.f32 0.125, %v4946_v34 }
0x1afc   :  { %v4971_v11 = vsel %vm4970_vm6, %v4956_v50, %v4955_v51 }
0x1afd   :  { %5670 = vmatmul.mubr.msk.f32.vlgmr.msra.gmra.mrb[54].mxu1 %vm326_vm1, %v4971_v11 }
0x1bd0   :  { %v5040_v53 = vpop.f32.mrb[54].mxu1 }
0x1bd1   :  { %v5041_v18 = vadd.f32 %v5181_v52, %v5040_v53  ;;  %v5671_v54 = vpop.f32.mrb[55].mxu1 }
0x1bd3   :  { %5045 = vst.msk [vmem:[#allocation20] sm:$0x3] %vm5044_vm7, %v5041_v18 }
0x1bd4   :  { %6104 = shalt.err (!%p6101_p8)
}
0x1bd5   :  { %s6105_s23 = scalar_lea.hbm %s7088_s19, 32 }
0x1bd6   :  { %p6106_p9 = scmp.ne.s32.totalorder %s7088_s19, %s6105_s23  ;;  %p6109_p10 = scmp.lt.u32.totalorder %s6105_s23, %s7088_s19 }
0x1bd8   :  { %p6111_p11 = pnand %p6109_p10, %p6106_p9 }
0x1bda   :  { %6114 = shalt.err (!%p6111_p11)
}
0x1bdb   :  { %5055 = dma.vmem_to_hbm [thread:$0]  %s5053_s18, 32, %s7088_s19, [#allocation4]  }
0x1bdc   :  { %6127 = dma.done.wait [#allocation4], 32  }
0x1bdd   :  { %6128 = vsyncadd [#allocation4], 4294967264 }
0x1bde   :  { %5059 = vsyncpa [#allocation3], 1 }
0x1bdf   :  { %5060 = vsyncpa [#allocation6], 1 }
0x1be0   :  { %5061 = vsyncpa [#allocation9], 1 }
0x1be1   :  { %5062 = vsyncpa [#allocation12], 1 }
0x1be2   :  { %5063 = vsyncpa [#allocation15], 1 }
0x1be3   :  { %5064 = vsyncpa [#allocation18], 1 }
0x1be4   :  { %5065 = vsyncpa [#allocation4], 1 }

</bundles_post_ra>
